<compile_context>
chip_gen: v7x
topology: tpu7x:2x2x1
jax: 0.10.0
libtpu: 0.0.40
codegen_flags: <defaults>
</compile_context>

<pallas_src>
import functools

import numpy as np
import jax
import jax.numpy as jnp
from jax import lax
from jax.experimental import pallas as pl
from jax.experimental.pallas import tpu as pltpu

MACHINE_EPSILON = float(np.finfo(np.double).eps)   # ~2.22e-16, representable in f32
INV_EPS = float(1.0 / MACHINE_EPSILON)             # ~4.5e15, representable in f32
BIG_DIST = 1e30                                    # padded-column sentinel for top_k
MAX_TILE = 512                                     # 512x512 f32 = 1 MiB per block


def _round_up(x, m):
    return ((x + m - 1) // m) * m


def _pick_tile(n, max_tile=MAX_TILE):
    # multiple of 128 keeps both the lane (128) and sublane (8) constraints happy,
    # and for tiny n we don't blow the problem up to 512.
    return int(min(max_tile, _round_up(max(int(n), 1), 128)))


# ----------------------------------------------------------------------------
# Kernel 1: tiled pairwise squared distances (MXU matmul hot path)
# ----------------------------------------------------------------------------
def _pdist_kernel(xr_ref, xct_ref, sqr_ref, sqc_ref, out_ref, *, n, tm, tn, has_pad):
    i = pl.program_id(0)
    j = pl.program_id(1)

    gram = lax.dot_general(xr_ref[...], xct_ref[...],
                           dimension_numbers=(((1,), (0,)), ((), ())),
                           preferred_element_type=jnp.float32)       # (tm, tn)
    # clamp f32 cancellation negatives at 0
    dist = jnp.maximum(-2.0 * gram + sqr_ref[...] + sqc_ref[...], 0.0)

    # masking (diag zero / padded cols -> BIG) is only needed on grid-diagonal tiles
    # and, when n is padded, on the last column tile -> gate it with pl.when.
    needs_mask = i == j
    if has_pad:
        needs_mask = needs_mask | (j == pl.num_programs(1) - 1)

    @pl.when(jnp.logical_not(needs_mask))
    def _store_plain():
        out_ref[...] = dist

    @pl.when(needs_mask)
    def _store_masked():
        row = i * tm + lax.broadcasted_iota(jnp.int32, (tm, tn), 0)
        col = j * tn + lax.broadcasted_iota(jnp.int32, (tm, tn), 1)
        d = jnp.where(row == col, 0.0, dist)
        if has_pad:
            d = jnp.where(col >= n, BIG_DIST, d)
        out_ref[...] = d


def pdist_pallas(x_pad, n_valid, tile):
    """Padded (n_pad, n_pad) squared-distance matrix; padded columns hold BIG_DIST."""
    x_pad = x_pad.astype(jnp.float32)
    n_pad, d = x_pad.shape
    has_pad = n_pad != n_valid
    sq = jnp.sum(x_pad * x_pad, axis=1, keepdims=True)               # (n_pad, 1)
    grid = (n_pad // tile, n_pad // tile)
    return pl.pallas_call(
        functools.partial(_pdist_kernel, n=n_valid, tm=tile, tn=tile, has_pad=has_pad),
        out_shape=jax.ShapeDtypeStruct((n_pad, n_pad), jnp.float32),
        grid_spec=pltpu.PrefetchScalarGridSpec(
            num_scalar_prefetch=0,
            grid=grid,
            in_specs=[pl.BlockSpec((tile, d), lambda i, j: (i, 0)),   # X row tile
                      pl.BlockSpec((d, tile), lambda i, j: (0, j)),   # X^T col tile
                      pl.BlockSpec((tile, 1), lambda i, j: (i, 0)),   # |x|^2 rows
                      pl.BlockSpec((1, tile), lambda i, j: (0, j))],  # |x|^2 cols
            out_specs=pl.BlockSpec((tile, tile), lambda i, j: (i, j))),
        compiler_params=pltpu.CompilerParams(
            dimension_semantics=("parallel", "parallel")),
    )(x_pad, x_pad.T, sq, sq.reshape(1, n_pad))


# ----------------------------------------------------------------------------
# Kernel 2: fused Student-t Q + KL divergence.  Per-row-tile vector accumulators
# live directly in the output blocks (reduction axis j is "arbitrary", row-tile
# axis i is "parallel" -> megacore on v7x).
# ----------------------------------------------------------------------------
def _tsne_loss_kernel(p_ref, yr_ref, yct_ref,
                      num_out, contrib_out, poff_out,
                      *, n, tm, tn, d_low, exaggeration_fac, has_pad):
    i = pl.program_id(0)
    j = pl.program_id(1)

    @pl.when(j == 0)
    def _init():
        num_out[...] = jnp.zeros_like(num_out)
        contrib_out[...] = jnp.zeros_like(contrib_out)
        poff_out[...] = jnp.zeros_like(poff_out)

    # low-dim squared distances from direct coordinate differences (exact, >= 0)
    yr = yr_ref[...]                       # (tm, d_low)
    yct = yct_ref[...]                     # (d_low, tn)
    dy = None
    for c in range(d_low):
        diff = yr[:, c:c + 1] - yct[c:c + 1, :]        # (tm,1)-(1,tn) -> (tm,tn)
        dy = diff * diff if dy is None else dy + diff * diff
    one_plus = 1.0 + dy

    row = i * tm + lax.broadcasted_iota(jnp.int32, (tm, tn), 0)
    col = j * tn + lax.broadcasted_iota(jnp.int32, (tm, tn), 1)
    offdiag = row != col

    eps_exag = jnp.float32(MACHINE_EPSILON * exaggeration_fac)
    if has_pad:
        valid = (row < n) & (col < n)
        fill = jnp.where(valid, eps_exag, 0.0)         # eps floor only on real entries
        keep = offdiag & valid
    else:
        fill = eps_exag
        keep = offdiag

    # P tile is already symmetric & normalized; apply eps floor + early exaggeration.
    p_sym = p_ref[...]
    if exaggeration_fac != 1.0:
        p_pos = p_sym * jnp.float32(exaggeration_fac)
    else:
        p_pos = p_sym
    p = jnp.where(p_sym > 0.0, p_pos, fill)

    # Student-t numerator 1/(1+dy): approx EUP reciprocal + one Newton step.
    r = pl.reciprocal(one_plus, approx=True)
    r = r * (2.0 - one_plus * r)
    num = jnp.where(keep, r, 0.0)

    # single fused log:  -log Q_ij = log(1+dy) + log(denom) off-diag, -log(eps) diag
    q_w = jnp.where(offdiag, one_plus, jnp.float32(INV_EPS))
    if has_pad:
        log_arg = jnp.where(p > 0.0, p * q_w, 1.0)     # padded entries contribute 0
    else:
        log_arg = p * q_w                              # p >= eps_exag > 0 everywhere
    contrib = p * jnp.log(log_arg)
    p_off = jnp.where(offdiag, p, 0.0)

    # lane-wide partial sums (sublane reduce only) accumulated in the output blocks
    num_out[...] += jnp.sum(num, axis=0, keepdims=True)[None]
    contrib_out[...] += jnp.sum(contrib, axis=0, keepdims=True)[None]
    poff_out[...] += jnp.sum(p_off, axis=0, keepdims=True)[None]


def tsne_loss_pallas(P_sym_pad, y, n, exaggeration_fac, tile):
    n_pad = P_sym_pad.shape[0]
    has_pad = n_pad != n
    y32 = y.astype(jnp.float32)
    d_low = y32.shape[1]
    y_pad = jnp.pad(y32, ((0, n_pad - n), (0, 0))) if has_pad else y32
    y_t = y_pad.T                                               # (d_low, n_pad), tiny
    g = n_pad // tile
    grid = (g, g)

    out_sd = jax.ShapeDtypeStruct((g, 1, tile), jnp.float32)
    part_spec = pl.BlockSpec((1, 1, tile), lambda i, j: (i, 0, 0))

    num_p, contrib_p, poff_p = pl.pallas_call(
        functools.partial(_tsne_loss_kernel, n=n, tm=tile, tn=tile, d_low=d_low,
                          exaggeration_fac=float(exaggeration_fac), has_pad=has_pad),
        out_shape=(out_sd, out_sd, out_sd),
        grid_spec=pltpu.PrefetchScalarGridSpec(
            num_scalar_prefetch=0,
            grid=grid,
            in_specs=[pl.BlockSpec((tile, tile), lambda i, j: (i, j)),    # P tile
                      pl.BlockSpec((tile, d_low), lambda i, j: (i, 0)),   # y rows
                      pl.BlockSpec((d_low, tile), lambda i, j: (0, j))],  # y^T cols
            out_specs=(part_spec, part_spec, part_spec)),
        compiler_params=pltpu.CompilerParams(
            dimension_semantics=("parallel", "arbitrary")),
    )(P_sym_pad, y_pad, y_t)

    s_num = jnp.sum(num_p)          # Student-t denominator (sum over off-diagonal)
    s_contrib = jnp.sum(contrib_p)
    s_poff = jnp.sum(poff_p)
    return s_contrib + jnp.log(s_num) * s_poff


# ----------------------------------------------------------------------------
# High-dimensional probability matrix P: distances via the Pallas pdist kernel,
# kNN + sparse scatter in plain JAX.  The scatter directly produces the padded,
# symmetric, normalized dense P (no n^2 post-processing passes).
# ----------------------------------------------------------------------------
def high_dim_prob_padded(x, beta, perplexity, tile):
    n, _ = x.shape
    n_pad = _round_up(n, tile)
    x32 = x.astype(jnp.float32)
    x_pad = jnp.pad(x32, ((0, n_pad - n), (0, 0))) if n_pad != n else x32
    beta = jnp.where(beta == 0.0, MACHINE_EPSILON, beta.astype(jnp.float32))

    dist_sq = pdist_pallas(x_pad, n, tile)               # (n_pad, n_pad), padded cols BIG
    k = 3 * perplexity + 2

    # k nearest neighbours per row (ascending distance); column 0 is self (dist 0)
    neg_vals, order = lax.top_k(-dist_sq, k)             # (n_pad, k)
    d_nn = -neg_vals[:n, 1:k]                            # (n, k-1)
    nn = order[:n, 1:k].astype(jnp.int32)                # (n, k-1)

    numerator = jnp.exp(-d_nn * beta[:, None])
    P_rows = numerator / jnp.sum(numerator, axis=1, keepdims=True)

    # normalization constant = sum of the symmetrized sparse values (== PyTorch max_P)
    sum_sym = 2.0 * jnp.sum(P_rows)
    vals = (P_rows / jnp.maximum(sum_sym, MACHINE_EPSILON)).reshape(-1)

    rows = jnp.broadcast_to(jnp.arange(n, dtype=jnp.int32)[:, None], nn.shape).reshape(-1)
    cols = nn.reshape(-1)
    # TODO(synk): data-dependent sparse scatter / densification stays in plain JAX.
    P_sym = jnp.zeros((n_pad, n_pad), jnp.float32)
    P_sym = P_sym.at[jnp.concatenate([rows, cols]),
                     jnp.concatenate([cols, rows])].add(jnp.concatenate([vals, vals]))
    return P_sym


# ----------------------------------------------------------------------------
# Module wrapper mirroring TSNEWrapperMapNet / TSNELoss
# ----------------------------------------------------------------------------
class TSNEWrapperMapNetPallas:
    def __init__(self, N, perplexity=30, early_exaggeration_fac=1):
        self.N = N
        self.perplexity = perplexity
        self.exaggeration_fac = float(early_exaggeration_fac)
        self.beta = jnp.zeros((N,), jnp.float32)   # module parameter, starts at zeros

    @functools.partial(jax.jit, static_argnums=0)
    def _loss(self, x, y, beta_sel):
        n = x.shape[0]
        tile = _pick_tile(n)
        P_sym = high_dim_prob_padded(x, beta_sel, self.perplexity, tile)
        return tsne_loss_pallas(P_sym, y, n, self.exaggeration_fac, tile)

    def __call__(self, data, output):
        x = output[0]
        y = output[1]
        indices = data[1]
        if indices is None:
            indices = jnp.arange(self.N, dtype=jnp.int32)
        elif len(indices) < 3 * self.perplexity + 2:
            raise ValueError(
                "Number of provided samples ({}) is too small for nearest "
                "neighbor estimation with given perplexity. Please use at "
                "least {}.".format(len(indices), 3 * self.perplexity + 2))
        return self._loss(x, y, self.beta[indices])


# ----------------------------------------------------------------------------
# Pure-JAX references (mirror the PyTorch code, f32) for the correctness checks
# ----------------------------------------------------------------------------
def _reference_pdist(x):
    x = x.astype(jnp.float32)
    sq = jnp.sum(x * x, axis=1, keepdims=True)
    d = -2.0 * (x @ x.T) + sq.T + sq
    d = jnp.maximum(d, 0.0)
    return jnp.where(jnp.eye(x.shape[0], dtype=bool), 0.0, d)


def _reference_loss_from_P(P_norm, y, exaggeration_fac):
    """KL(P||Q) given the already-symmetrized, normalized P (pre eps-floor)."""
    n = y.shape[0]
    P = jnp.where(P_norm > 0.0, P_norm, MACHINE_EPSILON) * exaggeration_fac
    y = y.astype(jnp.float32)
    sq = jnp.sum(y * y, axis=1, keepdims=True)
    dy = -2.0 * (y @ y.T) + sq.T + sq
    num = 1.0 / (1.0 + dy)
    upper = jnp.triu(jnp.ones((n, n), bool), k=1)
    denom = 2.0 * jnp.sum(jnp.where(upper, num, 0.0))
    Q = num / denom
    Q = jnp.where(jnp.eye(n, dtype=bool), 0.0, Q)
    Q = jnp.where(Q > 0.0, Q, MACHINE_EPSILON)
    return jnp.sum(P * jnp.log(P / Q))


# ----------------------------------------------------------------------------
if __name__ == "__main__":
    key = jax.random.PRNGKey(0)
    kx1, ky1, kx2, ky2 = jax.random.split(key, 4)

    perplexity = 8          # k = 3*perplexity + 2 = 26 neighbours
    d_high, d_low = 32, 2
    N_total = 256

    loss_mod = TSNEWrapperMapNetPallas(N_total, perplexity=perplexity,
                                       early_exaggeration_fac=1)

    # two cases: n=100 exercises the padded path, n=128 the unpadded one
    for n, kx, ky in ((100, kx1, ky1), (128, kx2, ky2)):
        x = jax.random.normal(kx, (n, d_high), dtype=jnp.float32)
        y = jax.random.normal(ky, (n, d_low), dtype=jnp.float32)
        indices = jnp.arange(n, dtype=jnp.int32)
        labels = jnp.zeros((n,), jnp.int32)

        loss = jax.block_until_ready(loss_mod((labels, indices), (x, y)))
        assert bool(jnp.isfinite(loss)), "loss must be finite"

        tile = _pick_tile(n)
        n_pad = _round_up(n, tile)

        # check kernel 1 against the reference pairwise-distance formula
        x_pad = jnp.pad(x, ((0, n_pad - n), (0, 0))) if n_pad != n else x
        d_pal = jax.block_until_ready(pdist_pallas(x_pad, n, tile))[:n, :n]
        d_ref = _reference_pdist(x)
        assert bool(jnp.allclose(d_pal, d_ref, rtol=1e-3, atol=1e-2)), \
            "pdist kernel mismatch (n={})".format(n)

        # check kernel 2 against the reference KL given the same (symmetrized,
        # normalized) P produced by the high-dim pipeline
        beta_sel = loss_mod.beta[indices]
        P_sym = high_dim_prob_padded(x, beta_sel, perplexity, tile)
        pal_loss = jax.block_until_ready(
            tsne_loss_pallas(P_sym, y, n, loss_mod.exaggeration_fac, tile))
        ref_loss = jax.block_until_ready(
            _reference_loss_from_P(P_sym[:n, :n], y, loss_mod.exaggeration_fac))
        assert bool(jnp.allclose(pal_loss, ref_loss, rtol=1e-3, atol=1e-3)), \
            "loss kernel {} != reference {} (n={})".format(float(pal_loss),
                                                           float(ref_loss), n)
        assert bool(jnp.allclose(loss, ref_loss, rtol=1e-3, atol=1e-3)), \
            "end-to-end loss {} != reference {} (n={})".format(float(loss),
                                                               float(ref_loss), n)

    print("KERNEL_OK")
</pallas_src>

<mosaic_0001>
module attributes {stable_mosaic.version = 11 : i64} {
  func.func @_pdist_kernel(%arg0: i32, %arg1: i32, %arg2: memref<128x32xf32, #tpu.memory_space<vmem>>, %arg3: memref<32x128xf32, #tpu.memory_space<vmem>>, %arg4: memref<128x1xf32, #tpu.memory_space<vmem>>, %arg5: memref<1x128xf32, #tpu.memory_space<vmem>>, %arg6: memref<128x128xf32, #tpu.memory_space<vmem>>) attributes {dimension_semantics = [#tpu.dimension_semantics<parallel>, #tpu.dimension_semantics<parallel>], iteration_bounds = array<i64: 1, 1>, scalar_prefetch = 0 : i64, scratch_operands = 0 : i64, tpu.core_type = #tpu.core_type<tc>, window_params = [{transform_indices = @transform_0, window_bounds = array<i64: 128, 32>}, {transform_indices = @transform_1, window_bounds = array<i64: 32, 128>}, {transform_indices = @transform_2, window_bounds = array<i64: 128, 1>}, {transform_indices = @transform_3, window_bounds = array<i64: 1, 128>}, {transform_indices = @transform_4, window_bounds = array<i64: 128, 128>}]} {
    %c0 = arith.constant 0 : index
    %c0_0 = arith.constant 0 : index
    %0 = vector.load %arg2[%c0, %c0_0] : memref<128x32xf32, #tpu.memory_space<vmem>>, vector<128x32xf32>
    %c0_1 = arith.constant 0 : index
    %c0_2 = arith.constant 0 : index
    %1 = vector.load %arg3[%c0_1, %c0_2] : memref<32x128xf32, #tpu.memory_space<vmem>>, vector<32x128xf32>
    %cst = arith.constant dense<0.000000e+00> : vector<128x128xf32>
    %2 = tpu.matmul %0, %1, %cst {dimension_numbers = #tpu.dot_dimension_numbers<[1], [0], [0], [1], [0, 0, 1, 1], [], []>} : vector<128x32xf32>, vector<32x128xf32>, vector<128x128xf32> -> vector<128x128xf32>
    %cst_3 = arith.constant -2.000000e+00 : f32
    %3 = vector.broadcast %cst_3 : f32 to vector<128x128xf32>
    %4 = arith.mulf %3, %2 : vector<128x128xf32>
    %c0_4 = arith.constant 0 : index
    %c0_5 = arith.constant 0 : index
    %5 = vector.load %arg4[%c0_4, %c0_5] : memref<128x1xf32, #tpu.memory_space<vmem>>, vector<128x1xf32>
    %6 = vector.broadcast %5 : vector<128x1xf32> to vector<128x128xf32>
    %7 = arith.addf %4, %6 : vector<128x128xf32>
    %c0_6 = arith.constant 0 : index
    %c0_7 = arith.constant 0 : index
    %8 = vector.load %arg5[%c0_6, %c0_7] : memref<1x128xf32, #tpu.memory_space<vmem>>, vector<1x128xf32>
    %9 = vector.broadcast %8 : vector<1x128xf32> to vector<128x128xf32>
    %10 = arith.addf %7, %9 : vector<128x128xf32>
    %cst_8 = arith.constant 0.000000e+00 : f32
    %11 = vector.broadcast %cst_8 : f32 to vector<128x128xf32>
    %12 = arith.maximumf %10, %11 : vector<128x128xf32>
    %13 = arith.cmpi eq, %arg0, %arg1 : i32
    %c0_i32 = arith.constant 0 : i32
    %14 = arith.cmpi eq, %arg1, %c0_i32 : i32
    %15 = arith.ori %13, %14 : i1
    %true = arith.constant true
    %16 = arith.xori %15, %true : i1
    %17 = arith.extui %16 : i1 to i32
    %c0_i32_9 = arith.constant 0 : i32
    %18 = arith.cmpi ne, %17, %c0_i32_9 : i32
    scf.if %18 {
      %c0_11 = arith.constant 0 : index
      %c0_12 = arith.constant 0 : index
      %21 = vector.load %arg6[%c0_11, %c0_12] : memref<128x128xf32, #tpu.memory_space<vmem>>, vector<128x128xf32>
      tpu.vector_store %arg6[%c0_11, %c0_12], %12 {strides = array<i32>} : memref<128x128xf32, #tpu.memory_space<vmem>>, vector<128x128xf32>,
    } else {
    }
    %19 = arith.extui %15 : i1 to i32
    %c0_i32_10 = arith.constant 0 : i32
    %20 = arith.cmpi ne, %19, %c0_i32_10 : i32
    scf.if %20 {
      %c128_i32 = arith.constant 128 : i32
      %21 = arith.muli %arg0, %c128_i32 : i32
      %22 = tpu.iota {dimensions = array<i32: 0>} : vector<128x128xi32>
      %23 = vector.broadcast %21 : i32 to vector<128x128xi32>
      %24 = arith.addi %23, %22 : vector<128x128xi32>
      %c128_i32_11 = arith.constant 128 : i32
      %25 = arith.muli %arg1, %c128_i32_11 : i32
      %26 = tpu.iota {dimensions = array<i32: 1>} : vector<128x128xi32>
      %27 = vector.broadcast %25 : i32 to vector<128x128xi32>
      %28 = arith.addi %27, %26 : vector<128x128xi32>
      %29 = arith.cmpi eq, %24, %28 : vector<128x128xi32>
      %cst_12 = arith.constant 0.000000e+00 : f32
      %30 = vector.broadcast %cst_12 : f32 to vector<128x128xf32>
      %31 = arith.select %29, %30, %12 : vector<128x128xi1>, vector<128x128xf32>
      %c100_i32 = arith.constant 100 : i32
      %32 = vector.broadcast %c100_i32 : i32 to vector<128x128xi32>
      %33 = arith.cmpi sge, %28, %32 : vector<128x128xi32>
      %cst_13 = arith.constant 1.000000e+30 : f32
      %34 = vector.broadcast %cst_13 : f32 to vector<128x128xf32>
      %35 = arith.select %33, %34, %31 : vector<128x128xi1>, vector<128x128xf32>
      %c0_14 = arith.constant 0 : index
      %c0_15 = arith.constant 0 : index
      %36 = vector.load %arg6[%c0_14, %c0_15] : memref<128x128xf32, #tpu.memory_space<vmem>>, vector<128x128xf32>
      tpu.vector_store %arg6[%c0_14, %c0_15], %35 {strides = array<i32>} : memref<128x128xf32, #tpu.memory_space<vmem>>, vector<128x128xf32>,
    } else {
    }
    return
  }
  func.func @transform_0(%arg0: i32, %arg1: i32) -> (i32, i32) {
    %c0_i32 = arith.constant 0 : i32
    %c0_i32_0 = arith.constant 0 : i32
    return %arg0, %c0_i32 : i32, i32
  }
  func.func @transform_1(%arg0: i32, %arg1: i32) -> (i32, i32) {
    %c0_i32 = arith.constant 0 : i32
    %c0_i32_0 = arith.constant 0 : i32
    return %c0_i32, %arg1 : i32, i32
  }
  func.func @transform_2(%arg0: i32, %arg1: i32) -> (i32, i32) {
    %c0_i32 = arith.constant 0 : i32
    %c0_i32_0 = arith.constant 0 : i32
    return %arg0, %c0_i32 : i32, i32
  }
  func.func @transform_3(%arg0: i32, %arg1: i32) -> (i32, i32) {
    %c0_i32 = arith.constant 0 : i32
    %c0_i32_0 = arith.constant 0 : i32
    return %c0_i32, %arg1 : i32, i32
  }
  func.func @transform_4(%arg0: i32, %arg1: i32) -> (i32, i32) {
    %c0_i32 = arith.constant 0 : i32
    return %arg0, %arg1 : i32, i32
  }
}

module attributes {stable_mosaic.version = 11 : i64} {
  func.func @_tsne_loss_kernel(%arg0: i32, %arg1: i32, %arg2: memref<128x128xf32, #tpu.memory_space<vmem>>, %arg3: memref<128x2xf32, #tpu.memory_space<vmem>>, %arg4: memref<2x128xf32, #tpu.memory_space<vmem>>, %arg5: memref<1x1x128xf32, #tpu.memory_space<vmem>>, %arg6: memref<1x1x128xf32, #tpu.memory_space<vmem>>, %arg7: memref<1x1x128xf32, #tpu.memory_space<vmem>>) attributes {dimension_semantics = [#tpu.dimension_semantics<parallel>, #tpu.dimension_semantics<arbitrary>], iteration_bounds = array<i64: 1, 1>, scalar_prefetch = 0 : i64, scratch_operands = 0 : i64, tpu.core_type = #tpu.core_type<tc>, window_params = [{transform_indices = @transform_0, window_bounds = array<i64: 128, 128>}, {transform_indices = @transform_1, window_bounds = array<i64: 128, 2>}, {transform_indices = @transform_2, window_bounds = array<i64: 2, 128>}, {transform_indices = @transform_3, window_bounds = array<i64: 1, 1, 128>}, {transform_indices = @transform_4, window_bounds = array<i64: 1, 1, 128>}, {transform_indices = @transform_5, window_bounds = array<i64: 1, 1, 128>}]} {
    %c0_i32 = arith.constant 0 : i32
    %0 = arith.cmpi eq, %arg1, %c0_i32 : i32
    %1 = arith.extui %0 : i1 to i32
    %c0_i32_0 = arith.constant 0 : i32
    %2 = arith.cmpi ne, %1, %c0_i32_0 : i32
    scf.if %2 {
      %cst_38 = arith.constant 0.000000e+00 : f32
      %78 = vector.broadcast %cst_38 : f32 to vector<1x1x128xf32>
      %c0_39 = arith.constant 0 : index
      %c0_40 = arith.constant 0 : index
      %c0_41 = arith.constant 0 : index
      %79 = vector.load %arg5[%c0_39, %c0_40, %c0_41] : memref<1x1x128xf32, #tpu.memory_space<vmem>>, vector<1x1x128xf32>
      tpu.vector_store %arg5[%c0_39, %c0_40, %c0_41], %78 {strides = array<i32>} : memref<1x1x128xf32, #tpu.memory_space<vmem>>, vector<1x1x128xf32>,
      %cst_42 = arith.constant 0.000000e+00 : f32
      %80 = vector.broadcast %cst_42 : f32 to vector<1x1x128xf32>
      %c0_43 = arith.constant 0 : index
      %c0_44 = arith.constant 0 : index
      %c0_45 = arith.constant 0 : index
      %81 = vector.load %arg6[%c0_43, %c0_44, %c0_45] : memref<1x1x128xf32, #tpu.memory_space<vmem>>, vector<1x1x128xf32>
      tpu.vector_store %arg6[%c0_43, %c0_44, %c0_45], %80 {strides = array<i32>} : memref<1x1x128xf32, #tpu.memory_space<vmem>>, vector<1x1x128xf32>,
      %cst_46 = arith.constant 0.000000e+00 : f32
      %82 = vector.broadcast %cst_46 : f32 to vector<1x1x128xf32>
      %c0_47 = arith.constant 0 : index
      %c0_48 = arith.constant 0 : index
      %c0_49 = arith.constant 0 : index
      %83 = vector.load %arg7[%c0_47, %c0_48, %c0_49] : memref<1x1x128xf32, #tpu.memory_space<vmem>>, vector<1x1x128xf32>
      tpu.vector_store %arg7[%c0_47, %c0_48, %c0_49], %82 {strides = array<i32>} : memref<1x1x128xf32, #tpu.memory_space<vmem>>, vector<1x1x128xf32>,
    } else {
    }
    %c0 = arith.constant 0 : index
    %c0_1 = arith.constant 0 : index
    %3 = vector.load %arg3[%c0, %c0_1] : memref<128x2xf32, #tpu.memory_space<vmem>>, vector<128x2xf32>
    %c0_2 = arith.constant 0 : index
    %c0_3 = arith.constant 0 : index
    %4 = vector.load %arg4[%c0_2, %c0_3] : memref<2x128xf32, #tpu.memory_space<vmem>>, vector<2x128xf32>
    %5 = vector.extract_strided_slice %3 {offsets = [0, 0], sizes = [128, 1], strides = [1, 1]} : vector<128x2xf32> to vector<128x1xf32>
    %6 = vector.extract_strided_slice %4 {offsets = [0, 0], sizes = [1, 128], strides = [1, 1]} : vector<2x128xf32> to vector<1x128xf32>
    %7 = vector.broadcast %5 : vector<128x1xf32> to vector<128x128xf32>
    %8 = vector.broadcast %6 : vector<1x128xf32> to vector<128x128xf32>
    %9 = arith.subf %7, %8 : vector<128x128xf32>
    %10 = arith.mulf %9, %9 : vector<128x128xf32>
    %11 = vector.extract_strided_slice %3 {offsets = [0, 1], sizes = [128, 1], strides = [1, 1]} : vector<128x2xf32> to vector<128x1xf32>
    %12 = vector.extract_strided_slice %4 {offsets = [1, 0], sizes = [1, 128], strides = [1, 1]} : vector<2x128xf32> to vector<1x128xf32>
    %13 = vector.broadcast %11 : vector<128x1xf32> to vector<128x128xf32>
    %14 = vector.broadcast %12 : vector<1x128xf32> to vector<128x128xf32>
    %15 = arith.subf %13, %14 : vector<128x128xf32>
    %16 = arith.mulf %15, %15 : vector<128x128xf32>
    %17 = arith.addf %10, %16 : vector<128x128xf32>
    %cst = arith.constant 1.000000e+00 : f32
    %18 = vector.broadcast %cst : f32 to vector<128x128xf32>
    %19 = arith.addf %18, %17 : vector<128x128xf32>
    %c128_i32 = arith.constant 128 : i32
    %20 = arith.muli %arg0, %c128_i32 : i32
    %21 = tpu.iota {dimensions = array<i32: 0>} : vector<128x128xi32>
    %22 = vector.broadcast %20 : i32 to vector<128x128xi32>
    %23 = arith.addi %22, %21 : vector<128x128xi32>
    %c128_i32_4 = arith.constant 128 : i32
    %24 = arith.muli %arg1, %c128_i32_4 : i32
    %25 = tpu.iota {dimensions = array<i32: 1>} : vector<128x128xi32>
    %26 = vector.broadcast %24 : i32 to vector<128x128xi32>
    %27 = arith.addi %26, %25 : vector<128x128xi32>
    %28 = arith.cmpi ne, %23, %27 : vector<128x128xi32>
    %c100_i32 = arith.constant 100 : i32
    %29 = vector.broadcast %c100_i32 : i32 to vector<128x128xi32>
    %30 = arith.cmpi slt, %23, %29 : vector<128x128xi32>
    %c100_i32_5 = arith.constant 100 : i32
    %31 = vector.broadcast %c100_i32_5 : i32 to vector<128x128xi32>
    %32 = arith.cmpi slt, %27, %31 : vector<128x128xi32>
    %33 = arith.andi %30, %32 : vector<128x128xi1>
    %cst_6 = arith.constant 2.22044605E-16 : f32
    %cst_7 = arith.constant 0.000000e+00 : f32
    %34 = vector.broadcast %cst_6 : f32 to vector<128x128xf32>
    %35 = vector.broadcast %cst_7 : f32 to vector<128x128xf32>
    %36 = arith.select %33, %34, %35 : vector<128x128xi1>, vector<128x128xf32>
    %37 = arith.andi %28, %33 : vector<128x128xi1>
    %c0_8 = arith.constant 0 : index
    %c0_9 = arith.constant 0 : index
    %38 = vector.load %arg2[%c0_8, %c0_9] : memref<128x128xf32, #tpu.memory_space<vmem>>, vector<128x128xf32>
    %cst_10 = arith.constant 0.000000e+00 : f32
    %39 = vector.broadcast %cst_10 : f32 to vector<128x128xf32>
    %40 = arith.cmpf ogt, %38, %39 : vector<128x128xf32>
    %41 = arith.select %40, %38, %36 : vector<128x128xi1>, vector<128x128xf32>
    %42 = tpu.reciprocal %19 {approx = true} : vector<128x128xf32> -> vector<128x128xf32>
    %43 = arith.mulf %19, %42 : vector<128x128xf32>
    %cst_11 = arith.constant 2.000000e+00 : f32
    %44 = vector.broadcast %cst_11 : f32 to vector<128x128xf32>
    %45 = arith.subf %44, %43 : vector<128x128xf32>
    %46 = arith.mulf %42, %45 : vector<128x128xf32>
    %cst_12 = arith.constant 0.000000e+00 : f32
    %47 = vector.broadcast %cst_12 : f32 to vector<128x128xf32>
    %48 = arith.select %37, %46, %47 : vector<128x128xi1>, vector<128x128xf32>
    %cst_13 = arith.constant 4.50359963E+15 : f32
    %49 = vector.broadcast %cst_13 : f32 to vector<128x128xf32>
    %50 = arith.select %28, %19, %49 : vector<128x128xi1>, vector<128x128xf32>
    %cst_14 = arith.constant 0.000000e+00 : f32
    %51 = vector.broadcast %cst_14 : f32 to vector<128x128xf32>
    %52 = arith.cmpf ogt, %41, %51 : vector<128x128xf32>
    %53 = arith.mulf %41, %50 : vector<128x128xf32>
    %cst_15 = arith.constant 1.000000e+00 : f32
    %54 = vector.broadcast %cst_15 : f32 to vector<128x128xf32>
    %55 = arith.select %52, %53, %54 : vector<128x128xi1>, vector<128x128xf32>
    %56 = math.log %55 : vector<128x128xf32>
    %57 = arith.mulf %41, %56 : vector<128x128xf32>
    %cst_16 = arith.constant 0.000000e+00 : f32
    %58 = vector.broadcast %cst_16 : f32 to vector<128x128xf32>
    %59 = arith.select %28, %41, %58 : vector<128x128xi1>, vector<128x128xf32>
    %c0_17 = arith.constant 0 : index
    %c0_18 = arith.constant 0 : index
    %c0_19 = arith.constant 0 : index
    %60 = vector.load %arg5[%c0_17, %c0_18, %c0_19] : memref<1x1x128xf32, #tpu.memory_space<vmem>>, vector<1x1x128xf32>
    %cst_20 = arith.constant dense<0.000000e+00> : vector<128xf32>
    %61 = vector.multi_reduction <add>, %48, %cst_20 [0] : vector<128x128xf32> to vector<128xf32>
    %62 = vector.shape_cast %61 : vector<128xf32> to vector<1x128xf32>
    %63 = vector.shape_cast %62 : vector<1x128xf32> to vector<1x1x128xf32>
    %64 = arith.addf %60, %63 : vector<1x1x128xf32>
    %c0_21 = arith.constant 0 : index
    %c0_22 = arith.constant 0 : index
    %c0_23 = arith.constant 0 : index
    %65 = vector.load %arg5[%c0_21, %c0_22, %c0_23] : memref<1x1x128xf32, #tpu.memory_space<vmem>>, vector<1x1x128xf32>
    tpu.vector_store %arg5[%c0_21, %c0_22, %c0_23], %64 {strides = array<i32>} : memref<1x1x128xf32, #tpu.memory_space<vmem>>, vector<1x1x128xf32>,
    %c0_24 = arith.constant 0 : index
    %c0_25 = arith.constant 0 : index
    %c0_26 = arith.constant 0 : index
    %66 = vector.load %arg6[%c0_24, %c0_25, %c0_26] : memref<1x1x128xf32, #tpu.memory_space<vmem>>, vector<1x1x128xf32>
    %cst_27 = arith.constant dense<0.000000e+00> : vector<128xf32>
    %67 = vector.multi_reduction <add>, %57, %cst_27 [0] : vector<128x128xf32> to vector<128xf32>
    %68 = vector.shape_cast %67 : vector<128xf32> to vector<1x128xf32>
    %69 = vector.shape_cast %68 : vector<1x128xf32> to vector<1x1x128xf32>
    %70 = arith.addf %66, %69 : vector<1x1x128xf32>
    %c0_28 = arith.constant 0 : index
    %c0_29 = arith.constant 0 : index
    %c0_30 = arith.constant 0 : index
    %71 = vector.load %arg6[%c0_28, %c0_29, %c0_30] : memref<1x1x128xf32, #tpu.memory_space<vmem>>, vector<1x1x128xf32>
    tpu.vector_store %arg6[%c0_28, %c0_29, %c0_30], %70 {strides = array<i32>} : memref<1x1x128xf32, #tpu.memory_space<vmem>>, vector<1x1x128xf32>,
    %c0_31 = arith.constant 0 : index
    %c0_32 = arith.constant 0 : index
    %c0_33 = arith.constant 0 : index
    %72 = vector.load %arg7[%c0_31, %c0_32, %c0_33] : memref<1x1x128xf32, #tpu.memory_space<vmem>>, vector<1x1x128xf32>
    %cst_34 = arith.constant dense<0.000000e+00> : vector<128xf32>
    %73 = vector.multi_reduction <add>, %59, %cst_34 [0] : vector<128x128xf32> to vector<128xf32>
    %74 = vector.shape_cast %73 : vector<128xf32> to vector<1x128xf32>
    %75 = vector.shape_cast %74 : vector<1x128xf32> to vector<1x1x128xf32>
    %76 = arith.addf %72, %75 : vector<1x1x128xf32>
    %c0_35 = arith.constant 0 : index
    %c0_36 = arith.constant 0 : index
    %c0_37 = arith.constant 0 : index
    %77 = vector.load %arg7[%c0_35, %c0_36, %c0_37] : memref<1x1x128xf32, #tpu.memory_space<vmem>>, vector<1x1x128xf32>
    tpu.vector_store %arg7[%c0_35, %c0_36, %c0_37], %76 {strides = array<i32>} : memref<1x1x128xf32, #tpu.memory_space<vmem>>, vector<1x1x128xf32>,
    return
  }
  func.func @transform_0(%arg0: i32, %arg1: i32) -> (i32, i32) {
    %c0_i32 = arith.constant 0 : i32
    return %arg0, %arg1 : i32, i32
  }
  func.func @transform_1(%arg0: i32, %arg1: i32) -> (i32, i32) {
    %c0_i32 = arith.constant 0 : i32
    %c0_i32_0 = arith.constant 0 : i32
    return %arg0, %c0_i32 : i32, i32
  }
  func.func @transform_2(%arg0: i32, %arg1: i32) -> (i32, i32) {
    %c0_i32 = arith.constant 0 : i32
    %c0_i32_0 = arith.constant 0 : i32
    return %c0_i32, %arg1 : i32, i32
  }
  func.func @transform_3(%arg0: i32, %arg1: i32) -> (i32, i32, i32) {
    %c0_i32 = arith.constant 0 : i32
    %c0_i32_0 = arith.constant 0 : i32
    %c0_i32_1 = arith.constant 0 : i32
    return %arg0, %c0_i32, %c0_i32_0 : i32, i32, i32
  }
  func.func @transform_4(%arg0: i32, %arg1: i32) -> (i32, i32, i32) {
    %c0_i32 = arith.constant 0 : i32
    %c0_i32_0 = arith.constant 0 : i32
    %c0_i32_1 = arith.constant 0 : i32
    return %arg0, %c0_i32, %c0_i32_0 : i32, i32, i32
  }
  func.func @transform_5(%arg0: i32, %arg1: i32) -> (i32, i32, i32) {
    %c0_i32 = arith.constant 0 : i32
    %c0_i32_0 = arith.constant 0 : i32
    %c0_i32_1 = arith.constant 0 : i32
    return %arg0, %c0_i32, %c0_i32_0 : i32, i32, i32
  }
}

</mosaic_0001>

<bundles_post_ra>
// kernel: neg.3
= control target key start
LH: loop header
LB: loop body
LE: loop exit
PB: predicated region body
PF: predicated region fallthrough
CT: control target
= control target key end

     0   :  { %s264_s0 = inlined_call_operand.vmem [shape: f32[128,128], index: 0, kind: input, shape index: {}]   ;;  %s265_s1 = inlined_call_operand.vmem [shape: f32[128,128], index: 1, kind: output, shape index: {}]  }
   0x1   :  { %v2_v0 = vld [vmem:[%s264_s0] sm:$0xff]  ;;  %v128_v1 = vld [vmem:[%s264_s0 + $0x8] sm:$0xff]  ;;  %v130_v2 = vld [vmem:[%s264_s0 + $0x10] sm:$0xff] }
   0x2   :  { %v5_v3 = vxor.u32 2147483648, %v2_v0  ;;  %v12_v4 = vxor.u32 2147483648, %v128_v1  ;;  %v20_v5 = vxor.u32 2147483648, %v130_v2  ;;  %v132_v6 = vld [vmem:[%s264_s0 + $0x18] sm:$0xff]  ;;  %v134_v7 = vld [vmem:[%s264_s0 + $0x20] sm:$0xff]  ;;  %v136_v8 = vld [vmem:[%s264_s0 + $0x28] sm:$0xff] }
   0x3   :  { %v28_v9 = vxor.u32 2147483648, %v132_v6  ;;  %v36_v10 = vxor.u32 2147483648, %v134_v7  ;;  %v44_v11 = vxor.u32 2147483648, %v136_v8  ;;  %v138_v12 = vld [vmem:[%s264_s0 + $0x30] sm:$0xff]  ;;  %v140_v13 = vld [vmem:[%s264_s0 + $0x38] sm:$0xff]  ;;  %v142_v14 = vld [vmem:[%s264_s0 + $0x40] sm:$0xff] }
   0x4   :  { %7 = vst [vmem:[%s265_s1] sm:$0xff] %v5_v3  ;;  %129 = vst [vmem:[%s265_s1 + $0x8] sm:$0xff] %v12_v4  ;;  %v52_v15 = vxor.u32 2147483648, %v138_v12  ;;  %v60_v16 = vxor.u32 2147483648, %v140_v13  ;;  %v68_v17 = vxor.u32 2147483648, %v142_v14  ;;  %v144_v18 = vld [vmem:[%s264_s0 + $0x48] sm:$0xff]  ;;  %v146_v19 = vld [vmem:[%s264_s0 + $0x50] sm:$0xff] }
   0x5   :  { %131 = vst [vmem:[%s265_s1 + $0x10] sm:$0xff] %v20_v5  ;;  %v148_v20 = vld [vmem:[%s264_s0 + $0x58] sm:$0xff]  ;;  %133 = vst [vmem:[%s265_s1 + $0x18] sm:$0xff] %v28_v9  ;;  %v76_v21 = vxor.u32 2147483648, %v144_v18  ;;  %v84_v22 = vxor.u32 2147483648, %v146_v19  ;;  %v150_v24 = vld [vmem:[%s264_s0 + $0x60] sm:$0xff] }
   0x6   :  { %135 = vst [vmem:[%s265_s1 + $0x20] sm:$0xff] %v36_v10  ;;  %137 = vst [vmem:[%s265_s1 + $0x28] sm:$0xff] %v44_v11  ;;  %v92_v23 = vxor.u32 2147483648, %v148_v20  ;;  %v152_v25 = vld [vmem:[%s264_s0 + $0x68] sm:$0xff]  ;;  %v154_v26 = vld [vmem:[%s264_s0 + $0x70] sm:$0xff]  ;;  %v100_v27 = vxor.u32 2147483648, %v150_v24 }
   0x7   :  { %139 = vst [vmem:[%s265_s1 + $0x30] sm:$0xff] %v52_v15  ;;  %141 = vst [vmem:[%s265_s1 + $0x38] sm:$0xff] %v60_v16  ;;  %v108_v28 = vxor.u32 2147483648, %v152_v25  ;;  %v116_v29 = vxor.u32 2147483648, %v154_v26  ;;  %v156_v30 = vld [vmem:[%s264_s0 + $0x78] sm:$0xff] }
   0x8   :  { %143 = vst [vmem:[%s265_s1 + $0x40] sm:$0xff] %v68_v17  ;;  %145 = vst [vmem:[%s265_s1 + $0x48] sm:$0xff] %v76_v21  ;;  %v124_v31 = vxor.u32 2147483648, %v156_v30 }
   0x9   :  { %147 = vst [vmem:[%s265_s1 + $0x50] sm:$0xff] %v84_v22  ;;  %149 = vst [vmem:[%s265_s1 + $0x58] sm:$0xff] %v92_v23 }
   0xa   :  { %151 = vst [vmem:[%s265_s1 + $0x60] sm:$0xff] %v100_v27  ;;  %153 = vst [vmem:[%s265_s1 + $0x68] sm:$0xff] %v108_v28 }
   0xb   :  { %155 = vst [vmem:[%s265_s1 + $0x70] sm:$0xff] %v116_v29  ;;  %157 = vst [vmem:[%s265_s1 + $0x78] sm:$0xff] %v124_v31 }

// kernel: _loss.2
= control target key start
LH: loop header
LB: loop body
LE: loop exit
PB: predicated region body
PF: predicated region fallthrough
CT: control target
= control target key end

     0   :  { %vm37_vm0 = vcmask 261120   ;;  %v616_v3 = vmov 0   ;;  %v405_v45 = vlaneseq  ;;  %s1009_s1 = inlined_call_operand.vmem [shape: f32[32,128], index: 1, kind: input, shape index: {}]   ;;  %s1010_s0 = inlined_call_operand.vmem [shape: f32[128,32], index: 0, kind: input, shape index: {}]   ;;  %s1011_s2 = inlined_call_operand.vmem [shape: f32[128,1], index: 2, kind: input, shape index: {}]   ;;  %s1012_s3 = inlined_call_operand.vmem [shape: f32[1,128], index: 3, kind: input, shape index: {}]   ;;  %s1013_s4 = inlined_call_operand.vmem [shape: f32[128,128], index: 4, kind: output, shape index: {}]  }
   0x1   :  { %v33_v0 = vld [vmem:[%s1009_s1] sm:$0xff]  ;;  %v34_v1 = vld [vmem:[%s1009_s1 + $0x8] sm:$0xff]  ;;  %v35_v2 = vld [vmem:[%s1009_s1 + $0x10] sm:$0xff]  ;;  %615 = vset.pattern.permute.xlu1 %v616_v3  ;;  %614 = vset.pattern.permute.xlu0 %v616_v3 }
   0x2   :  { %v601_v4 = vpack.c.bf16 %v34_v1, %v33_v0  ;;  %v36_v5 = vld [vmem:[%s1009_s1 + $0x18] sm:$0xff]  ;;  %v17_v6 = vld [vmem:[%s1010_s0] sm:$0xff]  ;;  %v249_v9 = vld [vmem:[%s1011_s2 + $0x10] sm:$0xff]  ;;  %v776_v47 = vshrl.u32 %v405_v45, 7  ;;  %v783_v50 = vand.u32 127, %v405_v45 }
   0x3   :  { %v25_v7 = vld [vmem:[%s1010_s0 + $0x40] sm:$0xff]  ;;  %v605_v8 = vpack.c.bf16 %v36_v5, %v35_v2  ;;  %577 = vmatprep.mubr.msk.f32.mxu0 %vm37_vm0, %v17_v6  ;;  %275 = vperm.xlu1 %615, %v249_v9   ;;  %v18_v11 = vld [vmem:[%s1010_s0 + $0x8] sm:$0xff]  ;;  %v19_v13 = vld [vmem:[%s1010_s0 + $0x10] sm:$0xff] }
   0x4   :  { %589 = vmatprep.mubr.msk.f32.mxu1 %vm37_vm0, %v25_v7  ;;  %602 = vmatprep.subr.bf16.mxu0 %v601_v4  ;;  %v247_v10 = vld [vmem:[%s1011_s2] sm:$0xff]  ;;  %v26_v12 = vld [vmem:[%s1010_s0 + $0x48] sm:$0xff]  ;;  %v27_v14 = vld [vmem:[%s1010_s0 + $0x50] sm:$0xff]  ;;  %v781_v49 = vadd.s32 8, %v776_v47  ;;  %v786_v51 = vadd.s32 72, %v776_v47  ;;  %v789_v52 = vadd.s32 64, %v776_v47  ;;  %vm444_vm4 = vcmp.eq.s32.totalorder %v776_v47, %v783_v50 }
   0x5   :  { %609 = vmatprep.subr.bf16.mxu1 %v601_v4  ;;  %604 = vmatpush3.bf16.msra.mxu0 %v601_v4  ;;  %v250_v15 = vld [vmem:[%s1011_s2 + $0x18] sm:$0xff]  ;;  %v248_v16 = vld [vmem:[%s1011_s2 + $0x8] sm:$0xff]  ;;  %v21_v19 = vld [vmem:[%s1010_s0 + $0x20] sm:$0xff]  ;;  %v792_v54 = vadd.s32 24, %v776_v47  ;;  %v795_v55 = vadd.s32 88, %v776_v47  ;;  %vm476_vm2 = vcmp.ge.s32.totalorder %v783_v50, 100 }
   0x6   :  { %611 = vmatpush3.bf16.msra.mxu1 %v601_v4  ;;  %606 = vmatprep.subr.bf16.mxu0 %v605_v8  ;;  %v20_v17 = vld [vmem:[%s1010_s0 + $0x18] sm:$0xff]  ;;  %v29_v20 = vld [vmem:[%s1010_s0 + $0x60] sm:$0xff]  ;;  %v252_v21 = vld [vmem:[%s1011_s2 + $0x28] sm:$0xff]  ;;  %vm445_vm1 = vcmp.eq.s32.totalorder %v781_v49, %v783_v50  ;;  %vm453_vm3 = vcmp.eq.s32.totalorder %v786_v51, %v783_v50  ;;  %vm452_vm5 = vcmp.eq.s32.totalorder %v789_v52, %v783_v50  ;;  %v807_v59 = vadd.s32 16, %v776_v47 }
   0x7   :  { %610 = vmatprep.subr.bf16.mxu1 %v605_v8  ;;  %265 = vperm.xlu0 %614, %v247_v10   ;;  %v28_v18 = vld [vmem:[%s1010_s0 + $0x58] sm:$0xff]  ;;  %v251_v22 = vld [vmem:[%s1011_s2 + $0x20] sm:$0xff]  ;;  %v22_v23 = vld [vmem:[%s1010_s0 + $0x28] sm:$0xff]  ;;  %v810_v60 = vadd.s32 80, %v776_v47  ;;  %v813_v1 = vadd.s32 40, %v776_v47  ;;  %v816_v2 = vadd.s32 104, %v776_v47  ;;  %vm447_vm6 = vcmp.eq.s32.totalorder %v792_v54, %v783_v50 }
   0x8   :  { %280 = vperm.xlu1 %615, %v250_v15   ;;  %v30_v24 = vld [vmem:[%s1010_s0 + $0x68] sm:$0xff]  ;;  %v23_v25 = vld [vmem:[%s1010_s0 + $0x30] sm:$0xff]  ;;  %v254_v27 = vld [vmem:[%s1011_s2 + $0x38] sm:$0xff]  ;;  %vm455_vm7 = vcmp.eq.s32.totalorder %v795_v55, %v783_v50  ;;  %v828_v6 = vadd.s32 32, %v776_v47  ;;  %v831_v7 = vadd.s32 96, %v776_v47  ;;  %vm446_vm8 = vcmp.eq.s32.totalorder %v807_v59, %v783_v50 }
   0x9   :  { %608 = vmatpush3.bf16.msra.mxu0 %v605_v8  ;;  %v31_v26 = vld [vmem:[%s1010_s0 + $0x70] sm:$0xff]  ;;  %v24_v29 = vld [vmem:[%s1010_s0 + $0x38] sm:$0xff]  ;;  %v256_v31 = vld [vmem:[%s1011_s2 + $0x48] sm:$0xff]  ;;  %vm454_vm9 = vcmp.eq.s32.totalorder %v810_v60, %v783_v50  ;;  %vm449_vm10 = vcmp.eq.s32.totalorder %v813_v1, %v783_v50  ;;  %vm457_vm11 = vcmp.eq.s32.totalorder %v816_v2, %v783_v50 }
   0xa   :  { %612 = vmatpush3.bf16.msra.mxu1 %v605_v8  ;;  %v253_v28 = vld [vmem:[%s1011_s2 + $0x30] sm:$0xff]  ;;  %v32_v30 = vld [vmem:[%s1010_s0 + $0x78] sm:$0xff]  ;;  %v255_v32 = vld [vmem:[%s1011_s2 + $0x40] sm:$0xff]  ;;  %vm448_vm12 = vcmp.eq.s32.totalorder %v828_v6, %v783_v50  ;;  %vm456_vm13 = vcmp.eq.s32.totalorder %v831_v7, %v783_v50 }
   0xb   :  { %270 = vperm.xlu0 %614, %v248_v16   ;;  %v258_v33 = vld [vmem:[%s1011_s2 + $0x58] sm:$0xff]  ;;  %v257_v34 = vld [vmem:[%s1011_s2 + $0x50] sm:$0xff]  ;;  %v260_v35 = vld [vmem:[%s1011_s2 + $0x68] sm:$0xff] }
   0xc   :  { %578 = vmatmul.mubr.msk.f32.vlgmr.msra.gmra.mrb[0].mxu0 %vm37_vm0, %v18_v11  ;;  %290 = vperm.xlu1 %615, %v252_v21   ;;  %v259_v36 = vld [vmem:[%s1011_s2 + $0x60] sm:$0xff]  ;;  %v262_v37 = vld [vmem:[%s1011_s2 + $0x78] sm:$0xff]  ;;  %v261_v38 = vld [vmem:[%s1011_s2 + $0x70] sm:$0xff]  ;;  %v834_v11 = vadd.s32 56, %v776_v47 }
   0xd   :  { %590 = vmatmul.mubr.msk.f32.vlgmr.msra.gmra.mrb[0].mxu1 %vm37_vm0, %v26_v12  ;;  %580 = vmatprep.mubr.msk.f32.mxu0 %vm37_vm0, %v19_v13  ;;  %v821_v3 = vld [vmem:[%s1012_s3] ss:$0 sm:$0xff]  ;;  %v837_v12 = vadd.s32 120, %v776_v47 }
   0xe   :  { %592 = vmatprep.mubr.msk.f32.mxu1 %vm37_vm0, %v27_v14  ;;  %vm451_vm14 = vcmp.eq.s32.totalorder %v834_v11, %v783_v50 }
   0xf   :  { %285 = vperm.xlu0 %614, %v251_v22   ;;  %vm459_vm15 = vcmp.eq.s32.totalorder %v837_v12, %v783_v50 }
  0x10   :  { %581 = vmatmul.mubr.msk.f32.gmra.mrb[2].mxu0 %vm37_vm0, %v20_v17  ;;  %300 = vperm.xlu1 %615, %v254_v27   ;;  %v840_v17 = vadd.s32 48, %v776_v47 }
  0x11   :  { %593 = vmatmul.mubr.msk.f32.gmra.mrb[2].mxu1 %vm37_vm0, %v28_v18  ;;  %583 = vmatprep.mubr.msk.f32.mxu0 %vm37_vm0, %v21_v19  ;;  %v843_v18 = vadd.s32 112, %v776_v47 }
  0x12   :  { %595 = vmatprep.mubr.msk.f32.mxu1 %vm37_vm0, %v29_v20 }
  0x13   :  { %295 = vperm.xlu0 %614, %v253_v28  }
  0x14   :  { %584 = vmatmul.mubr.msk.f32.gmra.mrb[4].mxu0 %vm37_vm0, %v22_v23  ;;  %310 = vperm.xlu1 %615, %v256_v31  }
  0x15   :  { %596 = vmatmul.mubr.msk.f32.gmra.mrb[4].mxu1 %vm37_vm0, %v30_v24  ;;  %586 = vmatprep.mubr.msk.f32.mxu0 %vm37_vm0, %v23_v25 }
  0x16   :  { %598 = vmatprep.mubr.msk.f32.mxu1 %vm37_vm0, %v31_v26 }
  0x17   :  { %305 = vperm.xlu0 %614, %v255_v32  }
  0x18   :  { %587 = vmatmul.mubr.msk.f32.gmra.mrb[6].mxu0 %vm37_vm0, %v24_v29  ;;  %320 = vperm.xlu1 %615, %v258_v33  }
  0x19   :  { %599 = vmatmul.mubr.msk.f32.gmra.mrb[6].mxu1 %vm37_vm0, %v32_v30  ;;  %vm450_vm0 = vcmp.eq.s32.totalorder %v840_v17, %v783_v50 }
  0x1b   :  { %315 = vperm.xlu0 %614, %v257_v34  }
  0x1c   :  { %330 = vperm.xlu1 %615, %v260_v35  }
  0x1f   :  { %325 = vperm.xlu0 %614, %v259_v36  }
  0x20   :  { %340 = vperm.xlu1 %615, %v262_v37  }
  0x23   :  { %335 = vperm.xlu0 %614, %v261_v38  }
  0x82   :  { %v766_v39 = vpop.permute.xlu1 %275 }
  0x86   :  { %v266_v40 = vpop.permute.xlu0 %265 }
  0x87   :  { %v768_v41 = vpop.permute.xlu1 %280 }
  0x8a   :  { %v271_v42 = vpop.permute.xlu0 %270 }
  0x8b   :  { %v770_v43 = vpop.permute.xlu1 %290 }
  0x8e   :  { %v772_v44 = vpop.permute.xlu0 %285 }
  0x8f   :  { %v774_v46 = vpop.permute.xlu1 %300 }
  0x92   :  { %v778_v48 = vpop.permute.xlu0 %295 }
  0x93   :  { %v311_v53 = vpop.permute.xlu1 %310 }
  0x96   :  { %v306_v56 = vpop.permute.xlu0 %305 }
  0x97   :  { %v321_v8 = vpop.permute.xlu1 %320 }
  0x9a   :  { %v316_v29 = vpop.permute.xlu0 %315 }
  0xdf   :  { %v579_v57 = vpop.f32.mrb[0].mxu0 }
  0xe0   :  { %v591_v58 = vpop.f32.mrb[0].mxu1  ;;  %v232_v61 = vmul.f32 -2.0, %v579_v57  ;;  %v152_v63 = vpop.f32.mrb[1].mxu0 }
  0xe1   :  { %v240_v62 = vmul.f32 -2.0, %v591_v58  ;;  %v192_v0 = vpop.f32.mrb[1].mxu1  ;;  %v231_v4 = vmul.f32 -2.0, %v152_v63 }
  0xe2   :  { %v239_v5 = vmul.f32 -2.0, %v192_v0  ;;  %v344_v9 = vadd.f32 %v271_v42, %v232_v61  ;;  %v331_v61 = vpop.permute.xlu1 %330 }
  0xe3   :  { %v352_v10 = vadd.f32 %v311_v53, %v240_v62  ;;  %v343_v13 = vadd.f32 %v266_v40, %v231_v4  ;;  %v582_v15 = vpop.f32.mrb[2].mxu0 }
  0xe4   :  { %v351_v14 = vadd.f32 %v306_v56, %v239_v5  ;;  %v594_v16 = vpop.f32.mrb[2].mxu1  ;;  %v367_v19 = vadd.f32 %v821_v3, %v344_v9  ;;  %v234_v21 = vmul.f32 -2.0, %v582_v15  ;;  %v162_v23 = vpop.f32.mrb[3].mxu0 }
  0xe5   :  { %v375_v20 = vadd.f32 %v821_v3, %v352_v10  ;;  %v242_v22 = vmul.f32 -2.0, %v594_v16  ;;  %v202_v24 = vpop.f32.mrb[3].mxu1  ;;  %v366_v25 = vadd.f32 %v821_v3, %v343_v13  ;;  %v233_v27 = vmul.f32 -2.0, %v162_v23 }
  0xe6   :  { %v374_v26 = vadd.f32 %v821_v3, %v351_v14  ;;  %v241_v28 = vmul.f32 -2.0, %v202_v24  ;;  %v383_v30 = vmax.f32 %v367_v19, 0.0  ;;  %v346_v32 = vadd.f32 %v768_v41, %v234_v21  ;;  %v326_v21 = vpop.permute.xlu0 %325 }
  0xe7   :  { %v391_v31 = vmax.f32 %v375_v20, 0.0  ;;  %v354_v33 = vadd.f32 %v321_v8, %v242_v22  ;;  %v382_v34 = vmax.f32 %v366_v25, 0.0  ;;  %v345_v36 = vadd.f32 %v766_v39, %v233_v27  ;;  %v585_v38 = vpop.f32.mrb[4].mxu0 }
  0xe8   :  { %v390_v35 = vmax.f32 %v374_v26, 0.0  ;;  %v353_v37 = vadd.f32 %v316_v29, %v241_v28  ;;  %v597_v40 = vpop.f32.mrb[4].mxu1  ;;  %v461_v42 = vsel %vm445_vm1, 0.0, %v383_v30  ;;  %v369_v53 = vadd.f32 %v821_v3, %v346_v32  ;;  %v172_v56 = vpop.f32.mrb[5].mxu0 }
  0xe9   :  { %v469_v45 = vsel %vm453_vm3, 0.0, %v391_v31  ;;  %v377_v41 = vadd.f32 %v821_v3, %v354_v33  ;;  %v212_v57 = vpop.f32.mrb[5].mxu1  ;;  %v478_v39 = vsel %vm476_vm2, 1e+30, %v461_v42  ;;  %v460_v49 = vsel %vm444_vm4, 0.0, %v382_v34  ;;  %v341_v32 = vpop.permute.xlu1 %340 }
  0xea   :  { %v486_v58 = vsel %vm476_vm2, 1e+30, %v469_v45  ;;  %v468_v51 = vsel %vm452_vm5, 0.0, %v390_v35  ;;  %494 = vst [vmem:[%s1013_s4 + $0x8] sm:$0xff] %v478_v39  ;;  %v477_v47 = vsel %vm476_vm2, 1e+30, %v460_v49  ;;  %v368_v0 = vadd.f32 %v821_v3, %v345_v36  ;;  %v336_v45 = vpop.permute.xlu0 %335 }
  0xeb   :  { %502 = vst [vmem:[%s1013_s4 + $0x48] sm:$0xff] %v486_v58  ;;  %v485_v52 = vsel %vm476_vm2, 1e+30, %v468_v51  ;;  %v385_v62 = vmax.f32 %v369_v53, 0.0  ;;  %v393_v63 = vmax.f32 %v377_v41, 0.0  ;;  %493 = vst [vmem:[%s1013_s4] sm:$0xff] %v477_v47  ;;  %v376_v4 = vadd.f32 %v821_v3, %v353_v37  ;;  %v588_v9 = vpop.f32.mrb[6].mxu0 }
  0xec   :  { %501 = vst [vmem:[%s1013_s4 + $0x40] sm:$0xff] %v485_v52  ;;  %v236_v5 = vmul.f32 -2.0, %v585_v38  ;;  %v244_v8 = vmul.f32 -2.0, %v597_v40  ;;  %v600_v10 = vpop.f32.mrb[6].mxu1  ;;  %v235_v15 = vmul.f32 -2.0, %v172_v56  ;;  %v243_v16 = vmul.f32 -2.0, %v212_v57 }
  0xed   :  { %v463_v13 = vsel %vm447_vm6, 0.0, %v385_v62  ;;  %v471_v14 = vsel %vm455_vm7, 0.0, %v393_v63  ;;  %v182_v19 = vpop.f32.mrb[7].mxu0  ;;  %v222_v20 = vpop.f32.mrb[7].mxu1  ;;  %v384_v24 = vmax.f32 %v368_v0, 0.0  ;;  %v392_v25 = vmax.f32 %v376_v4, 0.0 }
  0xee   :  { %v480_v22 = vsel %vm476_vm2, 1e+30, %v463_v13  ;;  %v488_v23 = vsel %vm476_vm2, 1e+30, %v471_v14  ;;  %v348_v54 = vadd.f32 %v770_v43, %v236_v5  ;;  %v356_v55 = vadd.f32 %v331_v61, %v244_v8 }
  0xef   :  { %496 = vst [vmem:[%s1013_s4 + $0x18] sm:$0xff] %v480_v22  ;;  %504 = vst [vmem:[%s1013_s4 + $0x58] sm:$0xff] %v488_v23  ;;  %v347_v26 = vadd.f32 %v772_v44, %v235_v15  ;;  %v355_v27 = vadd.f32 %v326_v21, %v243_v16  ;;  %v462_v28 = vsel %vm446_vm8, 0.0, %v384_v24  ;;  %v470_v29 = vsel %vm454_vm9, 0.0, %v392_v25 }
  0xf0   :  { %v238_v30 = vmul.f32 -2.0, %v588_v9  ;;  %v246_v31 = vmul.f32 -2.0, %v600_v10  ;;  %v479_v33 = vsel %vm476_vm2, 1e+30, %v462_v28  ;;  %v487_v43 = vsel %vm476_vm2, 1e+30, %v470_v29 }
  0xf1   :  { %v371_v44 = vadd.f32 %v821_v3, %v348_v54  ;;  %v379_v34 = vadd.f32 %v821_v3, %v356_v55  ;;  %495 = vst [vmem:[%s1013_s4 + $0x10] sm:$0xff] %v479_v33  ;;  %503 = vst [vmem:[%s1013_s4 + $0x50] sm:$0xff] %v487_v43  ;;  %v370_v59 = vadd.f32 %v821_v3, %v347_v26  ;;  %v237_v40 = vmul.f32 -2.0, %v182_v19 }
  0xf2   :  { %v378_v60 = vadd.f32 %v821_v3, %v355_v27  ;;  %v350_v35 = vadd.f32 %v774_v46, %v238_v30  ;;  %v358_v36 = vadd.f32 %v341_v32, %v246_v31  ;;  %v245_v42 = vmul.f32 -2.0, %v222_v20 }
  0xf3   :  { %v387_v37 = vmax.f32 %v371_v44, 0.0  ;;  %v395_v38 = vmax.f32 %v379_v34, 0.0  ;;  %v386_v53 = vmax.f32 %v370_v59, 0.0  ;;  %v349_v58 = vadd.f32 %v778_v48, %v237_v40 }
  0xf4   :  { %v394_v41 = vmax.f32 %v378_v60, 0.0  ;;  %v373_v56 = vadd.f32 %v821_v3, %v350_v35  ;;  %v381_v57 = vadd.f32 %v821_v3, %v358_v36  ;;  %v357_v49 = vadd.f32 %v336_v45, %v245_v42 }
  0xf5   :  { %v465_v39 = vsel %vm449_vm10, 0.0, %v387_v37  ;;  %v473_v46 = vsel %vm457_vm11, 0.0, %v395_v38  ;;  %v464_v47 = vsel %vm448_vm12, 0.0, %v386_v53  ;;  %v372_v7 = vadd.f32 %v821_v3, %v349_v58 }
  0xf6   :  { %v482_v51 = vsel %vm476_vm2, 1e+30, %v465_v39  ;;  %v490_v61 = vsel %vm476_vm2, 1e+30, %v473_v46  ;;  %v472_v1 = vsel %vm456_vm13, 0.0, %v394_v41  ;;  %v389_v6 = vmax.f32 %v373_v56, 0.0 }
  0xf7   :  { %498 = vst [vmem:[%s1013_s4 + $0x28] sm:$0xff] %v482_v51  ;;  %506 = vst [vmem:[%s1013_s4 + $0x68] sm:$0xff] %v490_v61  ;;  %v481_v48 = vsel %vm476_vm2, 1e+30, %v464_v47  ;;  %v489_v2 = vsel %vm476_vm2, 1e+30, %v472_v1  ;;  %v380_v62 = vadd.f32 %v821_v3, %v357_v49  ;;  %vm458_vm1 = vcmp.eq.s32.totalorder %v843_v18, %v783_v50 }
  0xf8   :  { %v397_v52 = vmax.f32 %v381_v57, 0.0  ;;  %497 = vst [vmem:[%s1013_s4 + $0x20] sm:$0xff] %v481_v48  ;;  %505 = vst [vmem:[%s1013_s4 + $0x60] sm:$0xff] %v489_v2  ;;  %v467_v63 = vsel %vm451_vm14, 0.0, %v389_v6  ;;  %v388_v5 = vmax.f32 %v372_v7, 0.0 }
  0xf9   :  { %v484_v4 = vsel %vm476_vm2, 1e+30, %v467_v63  ;;  %v396_v8 = vmax.f32 %v380_v62, 0.0 }
  0xfa   :  { %v475_v0 = vsel %vm459_vm15, 0.0, %v397_v52  ;;  %500 = vst [vmem:[%s1013_s4 + $0x38] sm:$0xff] %v484_v4  ;;  %v466_v11 = vsel %vm450_vm0, 0.0, %v388_v5 }
  0xfb   :  { %v492_v3 = vsel %vm476_vm2, 1e+30, %v475_v0  ;;  %v474_v12 = vsel %vm458_vm1, 0.0, %v396_v8  ;;  %v483_v17 = vsel %vm476_vm2, 1e+30, %v466_v11 }
  0xfc   :  { %508 = vst [vmem:[%s1013_s4 + $0x78] sm:$0xff] %v492_v3  ;;  %v491_v18 = vsel %vm476_vm2, 1e+30, %v474_v12  ;;  %499 = vst [vmem:[%s1013_s4 + $0x30] sm:$0xff] %v483_v17 }
  0xfd   :  { %507 = vst [vmem:[%s1013_s4 + $0x70] sm:$0xff] %v491_v18 }

// kernel: _loss.3
= control target key start
LH: loop header
LB: loop body
LE: loop exit
PB: predicated region body
PF: predicated region fallthrough
CT: control target
= control target key end

     0   :  { %v814_v0 = vmov 1   ;;  %v815_v1 = vmov 0   ;;  %v121_v12 = vlaneseq  ;;  %v816_v20 = vmov 0.0   ;;  %s1528_s1 = inlined_call_operand.vmem [shape: f32[128,2], index: 1, kind: input, shape index: {}]   ;;  %s1529_s0 = inlined_call_operand.vmem [shape: f32[128,128], index: 0, kind: input, shape index: {}]   ;;  %s1530_s3 = inlined_call_operand.vmem [shape: f32[1,1,128], index: 3, kind: output, shape index: {0}]   ;;  %s1531_s4 = inlined_call_operand.vmem [shape: f32[1,1,128], index: 4, kind: output, shape index: {1}]   ;;  %s1532_s5 = inlined_call_operand.vmem [shape: f32[1,1,128], index: 5, kind: output, shape index: {2}]   ;;  %s1533_s2 = inlined_call_operand.vmem [shape: f32[2,128], index: 2, kind: input, shape index: {}]  }
   0x1   :  { %754 = vset.pattern.permute.xlu1 %v814_v0  ;;  %753 = vset.pattern.permute.xlu0 %v815_v1  ;;  %v24_v2 = vld [vmem:[%s1528_s1] sm:$0xff]  ;;  %v25_v3 = vld [vmem:[%s1528_s1 + $0x8] sm:$0xff]  ;;  %v26_v4 = vld [vmem:[%s1528_s1 + $0x10] sm:$0xff]  ;;  %21 = vst [vmem:[%s1530_s3] sm:$0x1] %v816_v20 }
   0x2   :  { %158 = vperm.xlu1 %754, %v24_v2   ;;  %43 = vperm.xlu0 %753, %v24_v2   ;;  %v27_v5 = vld [vmem:[%s1528_s1 + $0x18] sm:$0xff]  ;;  %v28_v6 = vld [vmem:[%s1528_s1 + $0x20] sm:$0xff]  ;;  %v29_v7 = vld [vmem:[%s1528_s1 + $0x28] sm:$0xff]  ;;  %v878_v13 = vand.u32 127, %v121_v12  ;;  %v883_v15 = vshrl.u32 %v121_v12, 7  ;;  %22 = vst [vmem:[%s1531_s4] sm:$0x1] %v816_v20 }
   0x3   :  { %v30_v8 = vld [vmem:[%s1528_s1 + $0x30] sm:$0xff]  ;;  %v31_v9 = vld [vmem:[%s1528_s1 + $0x38] sm:$0xff]  ;;  %v32_v10 = vld [vmem:[%s1528_s1 + $0x40] sm:$0xff]  ;;  %23 = vst [vmem:[%s1532_s5] sm:$0x1] %v816_v20 }
   0x4   :  { %v33_v11 = vld [vmem:[%s1528_s1 + $0x48] sm:$0xff]  ;;  %v34_v14 = vld [vmem:[%s1528_s1 + $0x50] sm:$0xff]  ;;  %vm361_vm0 = vcmp.lt.s32.totalorder %v878_v13, 100  ;;  %v410_v16 = vld [vmem:[%s1529_s0] sm:$0xff]  ;;  %v896_v19 = vadd.s32 8, %v883_v15  ;;  %vm329_vm3 = vcmp.ne.s32.totalorder %v883_v15, %v878_v13  ;;  %v920_v26 = vadd.s32 16, %v883_v15 }
   0x5   :  { %v411_v17 = vld [vmem:[%s1529_s0 + $0x8] sm:$0xff]  ;;  %v35_v18 = vld [vmem:[%s1528_s1 + $0x58] sm:$0xff]  ;;  %v901_v21 = vsel %vm361_vm0, 2.220446e-16, %v816_v20  ;;  %vm426_vm1 = vcmp.gt.f32.partialorder %v410_v16, 0.0  ;;  %v412_v22 = vld [vmem:[%s1529_s0 + $0x10] sm:$0xff]  ;;  %v942_v33 = vadd.s32 24, %v883_v15 }
   0x6   :  { %162 = vperm.xlu1 %754, %v25_v3   ;;  %48 = vperm.xlu0 %753, %v25_v3   ;;  %vm427_vm2 = vcmp.gt.f32.partialorder %v411_v17, 0.0  ;;  %v36_v23 = vld [vmem:[%s1528_s1 + $0x60] sm:$0xff]  ;;  %v912_v24 = vsel %vm426_vm1, %v410_v16, %v901_v21  ;;  %vm330_vm4 = vcmp.ne.s32.totalorder %v896_v19, %v878_v13  ;;  %vm428_vm5 = vcmp.gt.f32.partialorder %v412_v22, 0.0  ;;  %v413_v29 = vld [vmem:[%s1529_s0 + $0x18] sm:$0xff]  ;;  %v37_v30 = vld [vmem:[%s1528_s1 + $0x68] sm:$0xff] }
   0x7   :  { %v917_v25 = vsel %vm427_vm2, %v411_v17, %v901_v21  ;;  %v650_v27 = vsel %vm329_vm3, %v912_v24, 0.0  ;;  %vm331_vm6 = vcmp.ne.s32.totalorder %v920_v26, %v878_v13  ;;  %v939_v32 = vsel %vm428_vm5, %v412_v22, %v901_v21  ;;  %v414_v35 = vld [vmem:[%s1529_s0 + $0x20] sm:$0xff]  ;;  %v38_v36 = vld [vmem:[%s1528_s1 + $0x70] sm:$0xff]  ;;  %v415_v41 = vld [vmem:[%s1529_s0 + $0x28] sm:$0xff] }
   0x8   :  { %v651_v28 = vsel %vm330_vm4, %v917_v25, 0.0  ;;  %v652_v34 = vsel %vm331_vm6, %v939_v32, 0.0  ;;  %vm429_vm7 = vcmp.gt.f32.partialorder %v413_v29, 0.0  ;;  %vm332_vm8 = vcmp.ne.s32.totalorder %v942_v33, %v878_v13  ;;  %v39_v42 = vld [vmem:[%s1528_s1 + $0x78] sm:$0xff]  ;;  %v416_v47 = vld [vmem:[%s1529_s0 + $0x30] sm:$0xff]  ;;  %v418_v57 = vld [vmem:[%s1529_s0 + $0x40] sm:$0xff] }
   0x9   :  { %v715_v31 = vadd.f32 %v651_v28, %v650_v27  ;;  %v957_v38 = vsel %vm429_vm7, %v413_v29, %v901_v21  ;;  %v960_v39 = vadd.s32 32, %v883_v15  ;;  %vm430_vm9 = vcmp.gt.f32.partialorder %v414_v35, 0.0  ;;  %v417_v52 = vld [vmem:[%s1529_s0 + $0x38] sm:$0xff]  ;;  %v419_v62 = vld [vmem:[%s1529_s0 + $0x48] sm:$0xff]  ;;  %v420_v3 = vld [vmem:[%s1529_s0 + $0x50] sm:$0xff] }
   0xa   :  { %166 = vperm.xlu1 %754, %v26_v4   ;;  %53 = vperm.xlu0 %753, %v26_v4   ;;  %v653_v40 = vsel %vm332_vm8, %v957_v38, 0.0  ;;  %v975_v44 = vsel %vm430_vm9, %v414_v35, %v901_v21  ;;  %v978_v45 = vadd.s32 40, %v883_v15  ;;  %vm431_vm11 = vcmp.gt.f32.partialorder %v415_v41, 0.0  ;;  %v422_v17 = vld [vmem:[%s1529_s0 + $0x60] sm:$0xff]  ;;  %v425_v35 = vld [vmem:[%s1529_s0 + $0x78] sm:$0xff] }
   0xb   :  { %v716_v37 = vadd.f32 %v715_v31, %v652_v34  ;;  %vm333_vm10 = vcmp.ne.s32.totalorder %v960_v39, %v878_v13  ;;  %v990_v49 = vsel %vm431_vm11, %v415_v41, %v901_v21  ;;  %v993_v50 = vadd.s32 48, %v883_v15 }
   0xc   :  { %v654_v46 = vsel %vm333_vm10, %v975_v44, 0.0  ;;  %vm334_vm12 = vcmp.ne.s32.totalorder %v978_v45, %v878_v13  ;;  %vm432_vm13 = vcmp.gt.f32.partialorder %v416_v47, 0.0  ;;  %v1009_v55 = vadd.s32 56, %v883_v15 }
   0xd   :  { %v717_v43 = vadd.f32 %v716_v37, %v653_v40  ;;  %v655_v51 = vsel %vm334_vm12, %v990_v49, 0.0  ;;  %vm335_vm14 = vcmp.ne.s32.totalorder %v993_v50, %v878_v13  ;;  %v1006_v54 = vsel %vm432_vm13, %v416_v47, %v901_v21 }
   0xe   :  { %170 = vperm.xlu1 %754, %v27_v5   ;;  %58 = vperm.xlu0 %753, %v27_v5   ;;  %v656_v56 = vsel %vm335_vm14, %v1006_v54, 0.0  ;;  %vm433_vm15 = vcmp.gt.f32.partialorder %v417_v52, 0.0  ;;  %vm336_vm1 = vcmp.ne.s32.totalorder %v1009_v55, %v878_v13  ;;  %v1024_v60 = vadd.s32 64, %v883_v15 }
   0xf   :  { %v718_v48 = vadd.f32 %v717_v43, %v654_v46  ;;  %v1021_v59 = vsel %vm433_vm15, %v417_v52, %v901_v21  ;;  %vm434_vm2 = vcmp.gt.f32.partialorder %v418_v57, 0.0  ;;  %v1039_v1 = vadd.s32 72, %v883_v15 }
  0x10   :  { %v657_v61 = vsel %vm336_vm1, %v1021_v59, 0.0  ;;  %vm337_vm5 = vcmp.ne.s32.totalorder %v1024_v60, %v878_v13  ;;  %vm435_vm7 = vcmp.gt.f32.partialorder %v419_v62, 0.0  ;;  %v1049_v4 = vadd.s32 96, %v883_v15 }
  0x11   :  { %v719_v53 = vadd.f32 %v718_v48, %v655_v51  ;;  %vm1536_vm9 = vcmp.ne.s32.totalorder %v1039_v1, %v878_v13  ;;  %vm436_vm11 = vcmp.gt.f32.partialorder %v420_v3, 0.0  ;;  %v1077_v12 = vadd.s32 88, %v883_v15 }
  0x12   :  { %174 = vperm.xlu1 %754, %v28_v6   ;;  %63 = vperm.xlu0 %753, %v28_v6   ;;  %v1054_v6 = vsel %vm435_vm7, %v419_v62, %v901_v21  ;;  %vm357_vm13 = vcmp.lt.s32.totalorder %v1049_v4, 100  ;;  %v1108_v29 = vadd.s32 104, %v883_v15  ;;  %v1118_v34 = vadd.s32 112, %v883_v15 }
  0x13   :  { %v720_v58 = vadd.f32 %v719_v53, %v656_v56  ;;  %vm1085_vm7 = vmand %vm357_vm13, %vm361_vm0  ;;  %vm438_vm13 = vcmp.gt.f32.partialorder %v422_v17, 0.0  ;;  %v1132_v41 = vadd.s32 120, %v883_v15 }
  0x14   :  { %v390_v28 = vsel %vm1085_vm7, 2.220446e-16, %v816_v20  ;;  %v40_v20 = vld [vmem:[%s1533_s2] sm:$0x3] }
  0x15   :  { %v721_v63 = vadd.f32 %v720_v58, %v657_v61 }
  0x16   :  { %178 = vperm.xlu1 %754, %v29_v7   ;;  %68 = vperm.xlu0 %753, %v29_v7   ;;  %v1057_v7 = vadd.s32 80, %v883_v15 }
  0x18   :  { %vm1534_vm15 = vcmp.ne.s32.totalorder %v1057_v7, %v878_v13 }
  0x1a   :  { %182 = vperm.xlu1 %754, %v30_v8   ;;  %73 = vperm.xlu0 %753, %v30_v8   ;;  %v659_v8 = vsel %vm1536_vm9, %v1054_v6, 0.0  ;;  %vm342_vm9 = vcmp.ne.s32.totalorder %v1108_v29, %v878_v13 }
  0x1e   :  { %186 = vperm.xlu1 %754, %v31_v9   ;;  %78 = vperm.xlu0 %753, %v31_v9   ;;  %v421_v9 = vld [vmem:[%s1529_s0 + $0x58] sm:$0xff] }
  0x22   :  { %190 = vperm.xlu1 %754, %v32_v10   ;;  %83 = vperm.xlu0 %753, %v32_v10  }
  0x26   :  { %194 = vperm.xlu1 %754, %v33_v11   ;;  %88 = vperm.xlu0 %753, %v33_v11   ;;  %v1074_v11 = vsel %vm436_vm11, %v420_v3, %v901_v21  ;;  %vm1535_vm11 = vcmp.ne.s32.totalorder %v1077_v12, %v878_v13 }
  0x2a   :  { %198 = vperm.xlu1 %754, %v34_v14   ;;  %93 = vperm.xlu0 %753, %v34_v14   ;;  %v660_v14 = vsel %vm1534_vm15, %v1074_v11, 0.0  ;;  %vm1537_vm15 = vcmp.ne.s32.totalorder %v1049_v4, %v878_v13 }
  0x2e   :  { %202 = vperm.xlu1 %754, %v35_v18   ;;  %98 = vperm.xlu0 %753, %v35_v18  }
  0x32   :  { %206 = vperm.xlu1 %754, %v36_v23   ;;  %103 = vperm.xlu0 %753, %v36_v23   ;;  %v423_v23 = vld [vmem:[%s1529_s0 + $0x68] sm:$0xff] }
  0x36   :  { %210 = vperm.xlu1 %754, %v37_v30   ;;  %108 = vperm.xlu0 %753, %v37_v30   ;;  %v1115_v30 = vsel %vm438_vm13, %v422_v17, %v390_v28  ;;  %vm441_vm13 = vcmp.gt.f32.partialorder %v425_v35, 0.0 }
  0x37   :  { %v1148_v51 = vsel %vm441_vm13, %v425_v35, 0.0  ;;  %vm554_vm13 = vcmp.gt.f32.partialorder %v912_v24, 0.0 }
  0x3a   :  { %214 = vperm.xlu1 %754, %v38_v36   ;;  %113 = vperm.xlu0 %753, %v38_v36   ;;  %v662_v36 = vsel %vm1537_vm15, %v1115_v30, 0.0  ;;  %vm343_vm15 = vcmp.ne.s32.totalorder %v1118_v34, %v878_v13 }
  0x3e   :  { %218 = vperm.xlu1 %754, %v39_v42   ;;  %118 = vperm.xlu0 %753, %v39_v42  }
  0x42   :  { %755 = vset.pattern.permute.xlu0 %v814_v0  ;;  %v1036_v0 = vsel %vm434_vm2, %v418_v57, %v901_v21  ;;  %vm437_vm2 = vcmp.gt.f32.partialorder %v421_v9, 0.0 }
  0x43   :  { %v658_v2 = vsel %vm337_vm5, %v1036_v0, 0.0  ;;  %v1095_v22 = vsel %vm437_vm2, %v421_v9, %v901_v21  ;;  %v424_v21 = vld [vmem:[%s1529_s0 + $0x70] sm:$0xff]  ;;  %vm439_vm2 = vcmp.gt.f32.partialorder %v423_v23, 0.0 }
  0x44   :  { %v722_v5 = vadd.f32 %v721_v63, %v658_v2  ;;  %v661_v27 = vsel %vm1535_vm11, %v1095_v22, 0.0  ;;  %vm440_vm11 = vcmp.gt.f32.partialorder %v424_v21, 0.0  ;;  %v1129_v37 = vsel %vm439_vm2, %v423_v23, 0.0  ;;  %v714_v63 = vld [vmem:[%s1532_s5] sm:$0x1] }
  0x45   :  { %v663_v42 = vsel %vm342_vm9, %v1129_v37, 0.0  ;;  %v1140_v46 = vsel %vm440_vm11, %v424_v21, 0.0  ;;  %vm1538_vm2 = vcmp.ne.s32.totalorder %v1132_v41, %v878_v13  ;;  %vm555_vm11 = vcmp.gt.f32.partialorder %v917_v25, 0.0 }
  0x46   :  { %v723_v10 = vadd.f32 %v722_v5, %v659_v8  ;;  %v664_v47 = vsel %vm343_vm15, %v1140_v46, 0.0  ;;  %v665_v52 = vsel %vm1538_vm2, %v1148_v51, 0.0  ;;  %v223_v5 = vsub.s32 1, %v883_v15 }
  0x47   :  { %v123_v8 = vsub.s32 0, %v883_v15  ;;  %vm556_vm2 = vcmp.gt.f32.partialorder %v939_v32, 0.0 }
  0x48   :  { %v724_v18 = vadd.f32 %v723_v10, %v660_v14  ;;  %v1173_v9 = vrot.slane %v40_v20, %v223_v5 }
  0x49   :  { %v1175_v10 = vrot.slane %v40_v20, %v123_v8 }
  0x4a   :  { %v725_v31 = vadd.f32 %v724_v18, %v661_v27 }
  0x4c   :  { %v726_v40 = vadd.f32 %v725_v31, %v662_v36 }
  0x4e   :  { %v727_v43 = vadd.f32 %v726_v40, %v663_v42 }
  0x50   :  { %v728_v48 = vadd.f32 %v727_v43, %v664_v47 }
  0x52   :  { %v729_v53 = vadd.f32 %v728_v48, %v665_v52 }
  0x54   :  { %v730_v56 = vrot.slane %v729_v53, 4 }
  0x56   :  { %v731_v57 = vadd.f32 %v730_v56, %v729_v53 }
  0x58   :  { %v732_v58 = vrot.slane %v731_v57, 2 }
  0x5a   :  { %v733_v61 = vadd.f32 %v732_v58, %v731_v57 }
  0x5c   :  { %v734_v62 = vrot.slane %v733_v61, 1 }
  0x5e   :  { %v735_v2 = vadd.f32 %v734_v62, %v733_v61 }
  0x60   :  { %v736_v3 = vadd.f32 %v735_v2, %v714_v63 }
  0x62   :  { %737 = vst [vmem:[%s1532_s5] sm:$0x1] %v736_v3 }
  0x81   :  { %v159_v14 = vpop.permute.xlu1 %158  ;;  %v44_v17 = vpop.permute.xlu0 %43 }
  0x82   :  { %v225_v18 = vsub.f32 %v159_v14, %v1173_v9  ;;  %v125_v23 = vsub.f32 %v44_v17, %v1175_v10 }
  0x84   :  { %v241_v27 = vmul.f32 %v225_v18, %v225_v18  ;;  %v141_v28 = vmul.f32 %v125_v23, %v125_v23 }
  0x85   :  { %v163_v21 = vpop.permute.xlu1 %162  ;;  %v49_v31 = vpop.permute.xlu0 %48 }
  0x86   :  { %v257_v35 = vadd.f32 %v241_v27, %v141_v28  ;;  %v226_v36 = vsub.f32 %v163_v21, %v1173_v9  ;;  %v126_v40 = vsub.f32 %v49_v31, %v1175_v10 }
  0x88   :  { %v273_v42 = vadd.f32 1.0, %v257_v35  ;;  %v242_v43 = vmul.f32 %v226_v36, %v226_v36  ;;  %v142_v47 = vmul.f32 %v126_v40, %v126_v40 }
  0x89   :  { %v167_v48 = vpop.permute.xlu1 %166  ;;  %v54_v52 = vpop.permute.xlu0 %53 }
  0x8a   :  { %v258_v53 = vadd.f32 %v242_v43, %v142_v47  ;;  %v227_v56 = vsub.f32 %v167_v48, %v1173_v9  ;;  %v127_v57 = vsub.f32 %v54_v52, %v1175_v10  ;;  %756 = vrcp.f32 %v273_v42 }
  0x8b   :  { %v538_v58 = vsel %vm329_vm3, %v273_v42, 4.5035996e+15 }
  0x8c   :  { %v274_v61 = vadd.f32 1.0, %v258_v53  ;;  %v243_v62 = vmul.f32 %v227_v56, %v227_v56  ;;  %v143_v63 = vmul.f32 %v127_v57, %v127_v57  ;;  %v570_v14 = vmul.f32 %v538_v58, %v912_v24 }
  0x8d   :  { %v171_v2 = vpop.permute.xlu1 %170  ;;  %v59_v3 = vpop.permute.xlu0 %58 }
  0x8e   :  { %v539_v5 = vsel %vm330_vm4, %v274_v61, 4.5035996e+15  ;;  %v228_v8 = vsub.f32 %v171_v2, %v1173_v9  ;;  %v128_v20 = vsub.f32 %v59_v3, %v1175_v10  ;;  %758 = vrcp.f32 %v274_v61 }
  0x8f   :  { %v571_v17 = vmul.f32 %v539_v5, %v917_v25  ;;  %v259_v18 = vadd.f32 %v243_v62, %v143_v63  ;;  %v586_v47 = vsel %vm554_vm13, %v570_v14, 1.0  ;;  %vm559_vm13 = vcmp.gt.f32.partialorder %v990_v49, 0.0 }
  0x90   :  { %v244_v23 = vmul.f32 %v228_v8, %v228_v8  ;;  %v144_v27 = vmul.f32 %v128_v20, %v128_v20 }
  0x91   :  { %v275_v28 = vadd.f32 1.0, %v259_v18  ;;  %v175_v21 = vpop.permute.xlu1 %174  ;;  %v64_v31 = vpop.permute.xlu0 %63  ;;  %v587_v35 = vsel %vm555_vm11, %v571_v17, 1.0  ;;  %vm557_vm11 = vcmp.gt.f32.partialorder %v957_v38, 0.0 }
  0x92   :  { %v260_v36 = vadd.f32 %v244_v23, %v144_v27  ;;  %v229_v40 = vsub.f32 %v175_v21, %v1173_v9  ;;  %v129_v43 = vsub.f32 %v64_v31, %v1175_v10 }
  0x93   :  { %760 = vrcp.f32 %v275_v28  ;;  %v540_v48 = vsel %vm331_vm6, %v275_v28, 4.5035996e+15 }
  0x94   :  { %v572_v52 = vmul.f32 %v540_v48, %v939_v32  ;;  %v276_v53 = vadd.f32 1.0, %v260_v36  ;;  %v245_v56 = vmul.f32 %v229_v40, %v229_v40  ;;  %v145_v57 = vmul.f32 %v129_v43, %v129_v43  ;;  %v757_v63 = vpop.eup %756 }
  0x95   :  { %762 = vlog2.f32 %v587_v35  ;;  %v179_v58 = vpop.permute.xlu1 %178  ;;  %v69_v62 = vpop.permute.xlu0 %68  ;;  %v474_v23 = vmul.f32 %v757_v63, %v273_v42 }
  0x96   :  { %764 = vrcp.f32 %v276_v53  ;;  %v541_v2 = vsel %vm332_vm8, %v276_v53, 4.5035996e+15  ;;  %v261_v3 = vadd.f32 %v245_v56, %v145_v57  ;;  %v588_v5 = vsel %vm556_vm2, %v572_v52, 1.0 }
  0x97   :  { %766 = vlog2.f32 %v586_v47  ;;  %v573_v8 = vmul.f32 %v541_v2, %v957_v38  ;;  %v230_v20 = vsub.f32 %v179_v58, %v1173_v9  ;;  %v130_v17 = vsub.f32 %v69_v62, %v1175_v10 }
  0x98   :  { %v1208_v14 = vadd.f32 1.0, %v261_v3  ;;  %v759_v18 = vpop.eup %758  ;;  %768 = vlog2.f32 %v588_v5  ;;  %vm558_vm2 = vcmp.gt.f32.partialorder %v975_v44, 0.0  ;;  %v490_v56 = vsub.f32 2.0, %v474_v23 }
  0x99   :  { %v246_v27 = vmul.f32 %v230_v20, %v230_v20  ;;  %v183_v21 = vpop.permute.xlu1 %182  ;;  %v74_v31 = vpop.permute.xlu0 %73  ;;  %v475_v35 = vmul.f32 %v759_v18, %v274_v61  ;;  %v146_v40 = vmul.f32 %v130_v17, %v130_v17  ;;  %v589_v43 = vsel %vm557_vm11, %v573_v8, 1.0  ;;  %vm1235_vm11 = vmand %vm329_vm3, %vm361_vm0 }
  0x9a   :  { %v542_v36 = vsel %vm333_vm10, %v1208_v14, 4.5035996e+15  ;;  %770 = vrcp.f32 %v1208_v14  ;;  %v231_v42 = vsub.f32 %v183_v21, %v1173_v9  ;;  %v131_v52 = vsub.f32 %v74_v31, %v1175_v10  ;;  %vm1255_vm3 = vmand %vm331_vm6, %vm361_vm0 }
  0x9b   :  { %v574_v47 = vmul.f32 %v542_v36, %v975_v44  ;;  %v262_v48 = vadd.f32 %v246_v27, %v146_v40  ;;  %v491_v62 = vsub.f32 2.0, %v475_v35  ;;  %772 = vlog2.f32 %v589_v43 }
  0x9c   :  { %v247_v20 = vmul.f32 %v231_v42, %v231_v42  ;;  %v147_v17 = vmul.f32 %v131_v52, %v131_v52  ;;  %vm561_vm6 = vcmp.gt.f32.partialorder %v1021_v59, 0.0 }
  0x9d   :  { %v761_v61 = vpop.eup %760  ;;  %v187_v57 = vpop.permute.xlu1 %186  ;;  %v1220_v3 = vadd.f32 1.0, %v262_v48  ;;  %v590_v8 = vsel %vm558_vm2, %v574_v47, 1.0  ;;  %v507_v52 = vmul.f32 %v759_v18, %v491_v62  ;;  %vm1245_vm2 = vmand %vm330_vm4, %vm361_vm0  ;;  %vm560_vm4 = vcmp.gt.f32.partialorder %v1006_v54, 0.0 }
  0x9e   :  { %v79_v58 = vpop.permute.xlu0 %78  ;;  %v476_v2 = vmul.f32 %v761_v61, %v275_v28  ;;  %v232_v36 = vsub.f32 %v187_v57, %v1173_v9  ;;  %v506_v28 = vmul.f32 %v757_v63, %v490_v56  ;;  %v263_v48 = vadd.f32 %v247_v20, %v147_v17 }
  0x9f   :  { %v763_v5 = vpop.eup %762  ;;  %774 = vrcp.f32 %v1220_v3  ;;  %v543_v23 = vsel %vm334_vm12, %v1220_v3, 4.5035996e+15  ;;  %v132_v57 = vsub.f32 %v79_v58, %v1175_v10  ;;  %v523_v26 = vsel %vm1245_vm2, %v507_v52, 0.0 }
  0xa0   :  { %v765_v27 = vpop.eup %764  ;;  %v492_v40 = vsub.f32 2.0, %v476_v2  ;;  %v605_v43 = vmul.f32 0.6931472, %v763_v5  ;;  %776 = vlog2.f32 %v590_v8  ;;  %v575_v47 = vmul.f32 %v543_v23, %v990_v49 }
  0xa1   :  { %v767_v21 = vpop.eup %766  ;;  %v191_v31 = vpop.permute.xlu1 %190  ;;  %v477_v63 = vmul.f32 %v765_v27, %v276_v53  ;;  %v248_v56 = vmul.f32 %v232_v36, %v232_v36  ;;  %v1259_v18 = vadd.f32 1.0, %v263_v48  ;;  %v148_v58 = vmul.f32 %v132_v57, %v132_v57 }
  0xa2   :  { %v84_v35 = vpop.permute.xlu0 %83  ;;  %v769_v2 = vpop.eup %768  ;;  %v603_v5 = vmul.f32 0.6931472, %v767_v21  ;;  %v508_v15 = vmul.f32 %v761_v61, %v492_v40  ;;  %v233_v20 = vsub.f32 %v191_v31, %v1173_v9  ;;  %v522_v61 = vsel %vm1235_vm11, %v506_v28, 0.0  ;;  %vm1321_vm11 = vmand %vm333_vm10, %vm361_vm0 }
  0xa3   :  { %v635_v36 = vmul.f32 %v605_v43, %v917_v25  ;;  %v591_v40 = vsel %vm559_vm13, %v575_v47, 1.0  ;;  %v607_v23 = vmul.f32 0.6931472, %v769_v2  ;;  %v493_v21 = vsub.f32 2.0, %v477_v63  ;;  %vm1291_vm13 = vmand %vm332_vm8, %vm361_vm0 }
  0xa4   :  { %v771_v17 = vpop.eup %770  ;;  %v264_v31 = vadd.f32 %v248_v56, %v148_v58  ;;  %v634_v57 = vmul.f32 %v603_v5, %v912_v24  ;;  %v524_v42 = vsel %vm1255_vm3, %v508_v15, 0.0  ;;  %v249_v28 = vmul.f32 %v233_v20, %v233_v20  ;;  %vm1351_vm3 = vmand %vm334_vm12, %vm361_vm0 }
  0xa5   :  { %v195_v19 = vpop.permute.xlu1 %194  ;;  %v773_v48 = vpop.eup %772  ;;  %v133_v25 = vsub.f32 %v84_v35, %v1175_v10  ;;  %v478_v43 = vmul.f32 %v771_v17, %v1208_v14  ;;  %778 = vlog2.f32 %v591_v40  ;;  %v544_v47 = vsel %vm335_vm14, %v1259_v18, 4.5035996e+15 }
  0xa6   :  { %v89_v62 = vpop.permute.xlu0 %88  ;;  %v1278_v52 = vadd.f32 1.0, %v264_v31  ;;  %v667_v24 = vadd.f32 %v523_v26, %v522_v61  ;;  %780 = vrcp.f32 %v1259_v18  ;;  %v234_v14 = vsub.f32 %v195_v19, %v1173_v9 }
  0xa7   :  { %v149_v35 = vmul.f32 %v133_v25, %v133_v25  ;;  %v691_v5 = vadd.f32 %v635_v36, %v634_v57  ;;  %v636_v8 = vmul.f32 %v607_v23, %v939_v32  ;;  %v509_v15 = vmul.f32 %v765_v27, %v493_v21 }
  0xa8   :  { %v609_v20 = vmul.f32 0.6931472, %v773_v48  ;;  %v668_v58 = vadd.f32 %v667_v24, %v524_v42  ;;  %v576_v40 = vmul.f32 %v544_v47, %v1006_v54  ;;  %782 = vrcp.f32 %v1278_v52 }
  0xa9   :  { %v199_v63 = vpop.permute.xlu1 %198  ;;  %v1280_v2 = vpop.eup %774  ;;  %v265_v19 = vadd.f32 %v249_v28, %v149_v35  ;;  %v494_v36 = vsub.f32 2.0, %v478_v43  ;;  %v545_v27 = vsel %vm336_vm1, %v1278_v52, 4.5035996e+15  ;;  %v134_v33 = vsub.f32 %v89_v62, %v1175_v10 }
  0xaa   :  { %v94_v56 = vpop.permute.xlu0 %93  ;;  %v777_v53 = vpop.eup %776  ;;  %v479_v32 = vmul.f32 %v1280_v2, %v1220_v3  ;;  %vm562_vm8 = vcmp.gt.f32.partialorder %v1036_v0, 0.0  ;;  %v250_v31 = vmul.f32 %v234_v14, %v234_v14  ;;  %v235_v48 = vsub.f32 %v199_v63, %v1173_v9 }
  0xab   :  { %v1304_v21 = vadd.f32 1.0, %v265_v19  ;;  %v135_v57 = vsub.f32 %v94_v56, %v1175_v10  ;;  %v525_v3 = vsel %vm1291_vm13, %v509_v15, 0.0  ;;  %v637_v42 = vmul.f32 %v609_v20, %v957_v38 }
  0xac   :  { %v611_v28 = vmul.f32 0.6931472, %v777_v53  ;;  %v150_v25 = vmul.f32 %v134_v33, %v134_v33  ;;  %v592_v62 = vsel %vm560_vm4, %v576_v40, 1.0  ;;  %v251_v43 = vmul.f32 %v235_v48, %v235_v48 }
  0xad   :  { %v203_v26 = vpop.permute.xlu1 %202  ;;  %784 = vrcp.f32 %v1304_v21  ;;  %v151_v47 = vmul.f32 %v135_v57, %v135_v57  ;;  %v692_v24 = vadd.f32 %v691_v5, %v636_v8  ;;  %v510_v35 = vmul.f32 %v771_v17, %v494_v36 }
  0xae   :  { %v99_v23 = vpop.permute.xlu0 %98  ;;  %v495_v14 = vsub.f32 2.0, %v479_v32  ;;  %v577_v63 = vmul.f32 %v545_v27, %v1021_v59  ;;  %v546_v5 = vsel %vm337_vm5, %v1304_v21, 4.5035996e+15  ;;  %v266_v17 = vadd.f32 %v250_v31, %v150_v25 }
  0xaf   :  { %v267_v8 = vadd.f32 %v251_v43, %v151_v47  ;;  %v236_v15 = vsub.f32 %v203_v26, %v1173_v9  ;;  %v779_v20 = vpop.eup %778  ;;  %v669_v53 = vadd.f32 %v668_v58, %v525_v3  ;;  %v693_v61 = vadd.f32 %v692_v24, %v637_v42 }
  0xb0   :  { %786 = vlog2.f32 %v592_v62  ;;  %vm563_vm2 = vcmp.gt.f32.partialorder %v1054_v6, 0.0  ;;  %v136_v39 = vsub.f32 %v99_v23, %v1175_v10  ;;  %v781_v40 = vpop.eup %780  ;;  %v638_v36 = vmul.f32 %v611_v28, %v975_v44 }
  0xb1   :  { %v207_v56 = vpop.permute.xlu1 %206  ;;  %v1333_v32 = vadd.f32 1.0, %v266_v17  ;;  %v1335_v27 = vadd.f32 1.0, %v267_v8  ;;  %vm564_vm10 = vcmp.gt.f32.partialorder %v1074_v11, 0.0  ;;  %v252_v33 = vmul.f32 %v236_v15, %v236_v15 }
  0xb2   :  { %v104_v19 = vpop.permute.xlu0 %103  ;;  %v526_v26 = vsel %vm1321_vm11, %v510_v35, 0.0  ;;  %v593_v58 = vsel %vm561_vm6, %v577_v63, 1.0  ;;  %v578_v31 = vmul.f32 %v546_v5, %v1036_v0  ;;  %v152_v48 = vmul.f32 %v136_v39, %v136_v39  ;;  %v783_v57 = vpop.eup %782 }
  0xb3   :  { %v511_v44 = vmul.f32 %v1280_v2, %v495_v14  ;;  %v613_v3 = vmul.f32 0.6931472, %v779_v20  ;;  %788 = vrcp.f32 %v1333_v32  ;;  %v237_v42 = vsub.f32 %v207_v56, %v1173_v9 }
  0xb4   :  { %v480_v25 = vmul.f32 %v781_v40, %v1259_v18  ;;  %vm1553_vm4 = vcmp.ne.s32.totalorder %v1039_v1, %v878_v13  ;;  %790 = vrcp.f32 %v1335_v27  ;;  %vm565_vm6 = vcmp.gt.f32.partialorder %v1095_v22, 0.0 }
  0xb5   :  { %v211_v23 = vpop.permute.xlu1 %210  ;;  %v547_v2 = vsel %vm1553_vm4, %v1333_v32, 4.5035996e+15  ;;  %v670_v43 = vadd.f32 %v669_v53, %v526_v26  ;;  %v694_v47 = vadd.f32 %v693_v61, %v638_v36  ;;  %vm1554_vm12 = vcmp.ne.s32.totalorder %v1057_v7, %v878_v13  ;;  %v690_v7 = vld [vmem:[%s1531_s4] sm:$0x1] }
  0xb6   :  { %v109_v62 = vpop.permute.xlu0 %108  ;;  %v548_v45 = vsel %vm1554_vm12, %v1335_v27, 4.5035996e+15  ;;  %v268_v24 = vadd.f32 %v252_v33, %v152_v48  ;;  %v481_v18 = vmul.f32 %v783_v57, %v1278_v52  ;;  %792 = vlog2.f32 %v593_v58 }
  0xb7   :  { %v594_v35 = vsel %vm562_vm8, %v578_v31, 1.0  ;;  %v137_v14 = vsub.f32 %v104_v19, %v1175_v10  ;;  %v785_v56 = vpop.eup %784  ;;  %v527_v38 = vsel %vm1351_vm3, %v511_v44, 0.0  ;;  %v639_v5 = vmul.f32 %v613_v3, %v990_v49 }
  0xb8   :  { %v579_v17 = vmul.f32 %v547_v2, %v1054_v6  ;;  %v253_v8 = vmul.f32 %v237_v42, %v237_v42  ;;  %vm566_vm13 = vcmp.gt.f32.partialorder %v1115_v30, 0.0  ;;  %v496_v15 = vsub.f32 2.0, %v480_v25 }
  0xb9   :  { %v215_v63 = vpop.permute.xlu1 %214  ;;  %v580_v52 = vmul.f32 %v548_v45, %v1074_v11  ;;  %v1376_v20 = vadd.f32 1.0, %v268_v24  ;;  %v153_v53 = vmul.f32 %v137_v14, %v137_v14  ;;  %v482_v19 = vmul.f32 %v785_v56, %v1304_v21 }
  0xba   :  { %794 = vlog2.f32 %v594_v35  ;;  %v238_v61 = vsub.f32 %v211_v23, %v1173_v9  ;;  %v138_v39 = vsub.f32 %v109_v62, %v1175_v10  ;;  %v787_v36 = vpop.eup %786  ;;  %v671_v49 = vadd.f32 %v670_v43, %v527_v38  ;;  %v114_v58 = vpop.permute.xlu0 %113 }
  0xbb   :  { %v497_v33 = vsub.f32 2.0, %v481_v18  ;;  %796 = vrcp.f32 %v1376_v20  ;;  %vm1555_vm8 = vcmp.ne.s32.totalorder %v1077_v12, %v878_v13  ;;  %v1386_v31 = vadd.f32 %v694_v47, %v639_v5 }
  0xbc   :  { %v549_v26 = vsel %vm1555_vm8, %v1376_v20, 4.5035996e+15  ;;  %v595_v21 = vsel %vm563_vm2, %v579_v17, 1.0  ;;  %v269_v23 = vadd.f32 %v253_v8, %v153_v53  ;;  %v512_v44 = vmul.f32 %v781_v40, %v496_v15  ;;  %vm1403_vm2 = vmand %vm335_vm14, %vm361_vm0 }
  0xbd   :  { %v581_v48 = vmul.f32 %v549_v26, %v1095_v22  ;;  %v596_v3 = vsel %vm564_vm10, %v580_v52, 1.0  ;;  %v254_v42 = vmul.f32 %v238_v61, %v238_v61  ;;  %v154_v28 = vmul.f32 %v138_v39, %v138_v39  ;;  %v219_v25 = vpop.permute.xlu1 %218  ;;  %v789_v2 = vpop.eup %788  ;;  %vm1422_vm14 = vmand %vm336_vm1, %vm361_vm0 }
  0xbe   :  { %v498_v62 = vsub.f32 2.0, %v482_v19  ;;  %v1393_v43 = vadd.f32 1.0, %v269_v23  ;;  %vm567_vm11 = vcmp.gt.f32.partialorder %v1129_v37, 0.0  ;;  %v239_v47 = vsub.f32 %v215_v63, %v1173_v9  ;;  %v791_v24 = vpop.eup %790  ;;  %v119_v53 = vpop.permute.xlu0 %118  ;;  %vm1435_vm1 = vmand %vm337_vm5, %vm361_vm0 }
  0xbf   :  { %v139_v45 = vsub.f32 %v114_v58, %v1175_v10  ;;  %v513_v18 = vmul.f32 %v783_v57, %v497_v33  ;;  %v483_v35 = vmul.f32 %v789_v2, %v1333_v32  ;;  %798 = vlog2.f32 %v595_v21 }
  0xc0   :  { %v597_v14 = vsel %vm565_vm6, %v581_v48, 1.0  ;;  %v484_v63 = vmul.f32 %v791_v24, %v1335_v27  ;;  %800 = vrcp.f32 %v1393_v43  ;;  %vm1558_vm10 = vcmp.ne.s32.totalorder %v1049_v4, %v878_v13  ;;  %v793_v5 = vpop.eup %792  ;;  %vm1455_vm6 = vmand %vm1553_vm4, %vm361_vm0 }
  0xc1   :  { %v550_v50 = vsel %vm1558_vm10, %v1393_v43, 4.5035996e+15  ;;  %v240_v38 = vsub.f32 %v219_v25, %v1173_v9  ;;  %v499_v27 = vsub.f32 2.0, %v483_v35  ;;  %802 = vlog2.f32 %v596_v3 }
  0xc2   :  { %v582_v57 = vmul.f32 %v550_v50, %v1115_v30  ;;  %v270_v17 = vadd.f32 %v254_v42, %v154_v28  ;;  %vm568_vm3 = vcmp.gt.f32.partialorder %v1140_v46, 0.0  ;;  %v528_v9 = vsel %vm1403_vm2, %v512_v44, 0.0 }
  0xc3   :  { %v514_v8 = vmul.f32 %v785_v56, %v498_v62  ;;  %v255_v15 = vmul.f32 %v239_v47, %v239_v47  ;;  %v155_v52 = vmul.f32 %v139_v45, %v139_v45  ;;  %v500_v19 = vsub.f32 2.0, %v484_v63 }
  0xc4   :  { %804 = vlog2.f32 %v597_v14  ;;  %v598_v61 = vsel %vm566_vm13, %v582_v57, 1.0  ;;  %v286_v39 = vadd.f32 1.0, %v270_v17  ;;  %v795_v33 = vpop.eup %794  ;;  %v615_v56 = vmul.f32 0.6931472, %v787_v36  ;;  %vm1568_vm13 = vmmov %vm1555_vm8 }
  0xc5   :  { %v529_v26 = vsel %vm1422_vm14, %v513_v18, 0.0  ;;  %v271_v58 = vadd.f32 %v255_v15, %v155_v52  ;;  %v256_v21 = vmul.f32 %v240_v38, %v240_v38  ;;  %v797_v48 = vpop.eup %796  ;;  %v515_v23 = vmul.f32 %v789_v2, %v499_v27  ;;  %vm1483_vm8 = vmand %vm1568_vm13, %vm361_vm0 }
  0xc6   :  { %806 = vlog2.f32 %v598_v61  ;;  %v551_v60 = vsel %vm342_vm9, %v286_v39, 4.5035996e+15  ;;  %v140_v44 = vsub.f32 %v119_v53, %v1175_v10  ;;  %vm569_vm5 = vcmp.gt.f32.partialorder %v1148_v51, 0.0  ;;  %vm1565_vm9 = vmmov %vm1554_vm12 }
  0xc7   :  { %v672_v3 = vadd.f32 %v671_v49, %v528_v9  ;;  %v617_v42 = vmul.f32 0.6931472, %v793_v5  ;;  %v530_v36 = vsel %vm1435_vm1, %v514_v8, 0.0  ;;  %v485_v29 = vmul.f32 %v797_v48, %v1376_v20  ;;  %vm1467_vm12 = vmand %vm1565_vm9, %vm361_vm0 }
  0xc8   :  { %v516_v25 = vmul.f32 %v791_v24, %v500_v19  ;;  %v583_v10 = vmul.f32 %v551_v60, %v1129_v37  ;;  %v287_v2 = vadd.f32 1.0, %v271_v58  ;;  %v156_v49 = vmul.f32 %v140_v44, %v140_v44 }
  0xc9   :  { %v640_v62 = vmul.f32 %v615_v56, %v1006_v54  ;;  %v673_v47 = vadd.f32 %v672_v3, %v529_v26  ;;  %v619_v45 = vmul.f32 0.6931472, %v795_v33  ;;  %v501_v40 = vsub.f32 2.0, %v485_v29  ;;  %v799_v20 = vpop.eup %798 }
  0xca   :  { %v531_v24 = vsel %vm1455_vm6, %v515_v23, 0.0  ;;  %v599_v18 = vsel %vm567_vm11, %v583_v10, 1.0  ;;  %v552_v54 = vsel %vm343_vm15, %v287_v2, 4.5035996e+15  ;;  %v272_v35 = vadd.f32 %v256_v21, %v156_v49  ;;  %v801_v14 = vpop.eup %800  ;;  %vm1572_vm15 = vmmov %vm1558_vm10 }
  0xcb   :  { %v674_v63 = vadd.f32 %v673_v47, %v530_v36  ;;  %v517_v50 = vmul.f32 %v797_v48, %v501_v40  ;;  %808 = vlog2.f32 %v599_v18  ;;  %v584_v38 = vmul.f32 %v552_v54, %v1140_v46  ;;  %v803_v5 = vpop.eup %802  ;;  %vm406_vm11 = vmand %vm1572_vm15, %vm1085_vm7  ;;  %v666_v40 = vld [vmem:[%s1530_s3] sm:$0x1] }
  0xcc   :  { %v641_v34 = vmul.f32 %v617_v42, %v1021_v59  ;;  %v532_v32 = vsel %vm1467_vm12, %v516_v25, 0.0  ;;  %v486_v27 = vmul.f32 %v801_v14, %v1393_v43  ;;  %v288_v57 = vadd.f32 1.0, %v272_v35 }
  0xcd   :  { %v696_v17 = vadd.f32 %v1386_v31, %v640_v62  ;;  %v621_v12 = vmul.f32 0.6931472, %v799_v20  ;;  %v675_v9 = vadd.f32 %v674_v63, %v531_v24  ;;  %v600_v8 = vsel %vm568_vm3, %v584_v38, 1.0 }
  0xce   :  { %v805_v15 = vpop.eup %804  ;;  %v533_v52 = vsel %vm1483_vm8, %v517_v50, 0.0  ;;  %v502_v53 = vsub.f32 2.0, %v486_v27  ;;  %810 = vlog2.f32 %v600_v8  ;;  %vm1571_vm0 = vcmp.ne.s32.totalorder %v1132_v41, %v878_v13 }
  0xcf   :  { %v553_v59 = vsel %vm1571_vm0, %v288_v57, 4.5035996e+15  ;;  %v642_v43 = vmul.f32 %v619_v45, %v1036_v0  ;;  %v623_v55 = vmul.f32 0.6931472, %v803_v5  ;;  %v676_v19 = vadd.f32 %v675_v9, %v532_v32 }
  0xd0   :  { %v585_v31 = vmul.f32 %v553_v59, %v1148_v51  ;;  %v807_v61 = vpop.eup %806  ;;  %v697_v39 = vadd.f32 %v696_v17, %v641_v34  ;;  %v518_v33 = vmul.f32 %v801_v14, %v502_v53  ;;  %v643_v56 = vmul.f32 %v621_v12, %v1054_v6 }
  0xd1   :  { %v625_v26 = vmul.f32 0.6931472, %v805_v15  ;;  %v677_v41 = vadd.f32 %v676_v19, %v533_v52  ;;  %v644_v16 = vmul.f32 %v623_v55, %v1074_v11  ;;  %v627_v48 = vmul.f32 0.6931472, %v807_v61 }
  0xd2   :  { %v601_v0 = vsel %vm569_vm5, %v585_v31, 1.0  ;;  %v534_v58 = vsel %vm406_vm11, %v518_v33, 0.0  ;;  %v698_v21 = vadd.f32 %v697_v39, %v642_v43 }
  0xd3   :  { %812 = vlog2.f32 %v601_v0  ;;  %v678_v13 = vadd.f32 %v677_v41, %v534_v58  ;;  %v645_v60 = vmul.f32 %v625_v26, %v1095_v22  ;;  %v646_v6 = vmul.f32 %v627_v48, %v1115_v30 }
  0xd4   :  { %v699_v23 = vadd.f32 %v698_v21, %v643_v56 }
  0xd5   :  { %v809_v4 = vpop.eup %808  ;;  %v682_v44 = vrot.slane %v678_v13, 4 }
  0xd6   :  { %v629_v3 = vmul.f32 0.6931472, %v809_v4  ;;  %v700_v42 = vadd.f32 %v699_v23, %v644_v16 }
  0xd7   :  { %v683_v36 = vadd.f32 %v682_v44, %v678_v13 }
  0xd8   :  { %v811_v28 = vpop.eup %810  ;;  %v701_v29 = vadd.f32 %v700_v42, %v645_v60  ;;  %v647_v10 = vmul.f32 %v629_v3, %v1129_v37 }
  0xd9   :  { %v684_v25 = vrot.slane %v683_v36, 2  ;;  %v631_v2 = vmul.f32 0.6931472, %v811_v28 }
  0xda   :  { %v702_v11 = vadd.f32 %v701_v29, %v646_v6 }
  0xdb   :  { %v685_v49 = vadd.f32 %v684_v25, %v683_v36  ;;  %v648_v62 = vmul.f32 %v631_v2, %v1140_v46 }
  0xdc   :  { %v703_v1 = vadd.f32 %v702_v11, %v647_v10 }
  0xdd   :  { %v813_v47 = vpop.eup %812  ;;  %v686_v45 = vrot.slane %v685_v49, 1 }
  0xde   :  { %v633_v22 = vmul.f32 0.6931472, %v813_v47  ;;  %v704_v20 = vadd.f32 %v703_v1, %v648_v62 }
  0xdf   :  { %v687_v30 = vadd.f32 %v686_v45, %v685_v49 }
  0xe0   :  { %v649_v24 = vmul.f32 %v633_v22, %v1148_v51 }
  0xe1   :  { %v688_v18 = vadd.f32 %v687_v30, %v666_v40 }
  0xe2   :  { %v705_v54 = vadd.f32 %v704_v20, %v649_v24 }
  0xe3   :  { %689 = vst [vmem:[%s1530_s3] sm:$0x1] %v688_v18 }
  0xe4   :  { %v706_v37 = vrot.slane %v705_v54, 4 }
  0xe6   :  { %v707_v46 = vadd.f32 %v706_v37, %v705_v54 }
  0xe8   :  { %v708_v35 = vrot.slane %v707_v46, 2 }
  0xea   :  { %v709_v14 = vadd.f32 %v708_v35, %v707_v46 }
  0xec   :  { %v710_v63 = vrot.slane %v709_v14, 1 }
  0xee   :  { %v711_v50 = vadd.f32 %v710_v63, %v709_v14 }
  0xf0   :  { %v712_v38 = vadd.f32 %v711_v50, %v690_v7 }
  0xf2   :  { %713 = vst [vmem:[%s1531_s4] sm:$0x1] %v712_v38 }

</bundles_post_ra>
